<compile_context>
chip_gen: v5e
topology: v5e:2x2
jax: 0.10.0
libtpu: 0.0.40
codegen_flags: <defaults>
</compile_context>

<pallas_src>
import functools

import jax
import jax.numpy as jnp
from jax.experimental import pallas as pl
from jax.experimental.pallas import tpu as pltpu


def _round_up(v, m):
    return -(-v // m) * m


def _pick_tile(n):
    """Row-tile size.

    <= 512 rows: single exact block (no padding, no alignment constraint).
    Mid-size bags: 256-row tiles (>=2 grid steps -> megacore + pipelining).
    Large bags: 512-row tiles (near HBM roofline per the tiling sweep).
    Multi-tile sizes are multiples of 128 so the transposed (nc8, tile)
    output block keeps its lane axis aligned.
    """
    if n <= 512:
        return n
    if n <= 2048:
        return 256
    return 512


def _gated_attn_kernel(x_ref, wab_ref, bab_ref, wc_ref, bc_ref, out_ref, *, d):
    x = x_ref[...]

    # Fused gate projection: (tile, L) @ (L, 2D) -> (tile, 2D), f32 acc on MXU.
    g = jnp.dot(x, wab_ref[...], preferred_element_type=jnp.float32) + bab_ref[...]

    a = jnp.tanh(g[:, :d])            # EUP
    b = jax.nn.sigmoid(g[:, d:])      # EUP
    h = a * b                         # VPU

    # Classifier as an NT matmul: (nc8, D) . (tile, D)^T -> (nc8, tile).
    # Row-tile on the lane axis -> lane-dense stores + tiny HBM writeback.
    scores = jax.lax.dot_general(
        wc_ref[...], h, (((1,), (1,)), ((), ())),
        preferred_element_type=jnp.float32) + bc_ref[...]

    out_ref[...] = scores.astype(out_ref.dtype)


@functools.partial(jax.jit, static_argnames=("tile_n",))
def dattn_net_gated(x, wa, ba, wb, bb, wc, bc, *, tile_n=None):
    """Returns (A, x) exactly like the PyTorch module (eval mode).

    Weights are stored transposed relative to torch, i.e. (in_features,
    out_features), so the math is plain x @ W + b.
    """
    n, l = x.shape
    d = wa.shape[1]
    nc = wc.shape[1]

    # ---- wrapper-side weight packing (layout plumbing; pre-packable once) ----
    w_ab = jnp.concatenate([wa, wb], axis=1)                          # (L, 2D)
    b_ab = jnp.concatenate([ba.reshape(1, d), bb.reshape(1, d)], 1)   # (1, 2D)

    nc8 = max(8, _round_up(nc, 8))                                    # sublane-pad classes
    wc_t = jnp.pad(wc.T, ((0, nc8 - nc), (0, 0)))                     # (nc8, D)
    bc_t = jnp.pad(bc.reshape(nc, 1), ((0, nc8 - nc), (0, 0)))        # (nc8, 1)

    if tile_n is None:
        tile_n = _pick_tile(n)
    grid = (pl.cdiv(n, tile_n),)

    resident = lambda i: (0, 0)   # weights/biases stay resident across the grid

    kernel = functools.partial(_gated_attn_kernel, d=d)

    a_t = pl.pallas_call(
        kernel,
        out_shape=jax.ShapeDtypeStruct((nc8, n), x.dtype),
        grid=grid,
        in_specs=[
            pl.BlockSpec((tile_n, l), lambda i: (i, 0)),   # x row tile
            pl.BlockSpec((l, 2 * d), resident),            # [Wa || Wb]
            pl.BlockSpec((1, 2 * d), resident),            # [ba || bb]
            pl.BlockSpec((nc8, d), resident),              # Wc^T (row-padded)
            pl.BlockSpec((nc8, 1), resident),              # bc   (row-padded)
        ],
        out_specs=pl.BlockSpec((nc8, tile_n), lambda i: (0, i)),
        compiler_params=pltpu.CompilerParams(
            dimension_semantics=("parallel",)),
    )(x, w_ab, b_ab, wc_t, bc_t)

    return a_t[:nc].T, x


def _init_params(key, L, D, n_classes, dtype=jnp.float32):
    """Deterministic synthetic parameters (uniform, like torch Linear init)."""
    ks = jax.random.split(key, 6)
    lim_l = 1.0 / (L ** 0.5)
    lim_d = 1.0 / (D ** 0.5)
    wa = jax.random.uniform(ks[0], (L, D), dtype, -lim_l, lim_l)
    ba = jax.random.uniform(ks[1], (1, D), dtype, -lim_l, lim_l)
    wb = jax.random.uniform(ks[2], (L, D), dtype, -lim_l, lim_l)
    bb = jax.random.uniform(ks[3], (1, D), dtype, -lim_l, lim_l)
    wc = jax.random.uniform(ks[4], (D, n_classes), dtype, -lim_d, lim_d)
    bc = jax.random.uniform(ks[5], (1, n_classes), dtype, -lim_d, lim_d)
    return wa, ba, wb, bb, wc, bc


def _ref_forward(x, wa, ba, wb, bb, wc, bc):
    a = jnp.tanh(x @ wa + ba)
    b = jax.nn.sigmoid(x @ wb + bb)
    return (a * b) @ wc + bc


if __name__ == "__main__":
    key = jax.random.PRNGKey(0)

    # Small shapes consistent with the module: defaults (L=1024, D=256, nc=1)
    # on a bag of 32 instances, plus a multi-class variant.
    for (N, L, D, NC) in [(32, 1024, 256, 1), (16, 256, 128, 3)]:
        kx, kp, key = jax.random.split(key, 3)
        x = jax.random.normal(kx, (N, L), jnp.float32)
        params = _init_params(kp, L, D, NC)

        A, x_out = dattn_net_gated(x, *params)
        jax.block_until_ready((A, x_out))

        A_ref = _ref_forward(x, *params)
        assert A.shape == (N, NC), A.shape
        assert x_out.shape == (N, L), x_out.shape
        assert jnp.allclose(A, A_ref, atol=2e-5, rtol=2e-5), "attention scores mismatch"
        assert jnp.array_equal(x_out, x), "passthrough x mismatch"

    print("KERNEL_OK")
</pallas_src>

<mosaic_0001>
module attributes {stable_mosaic.version = 11 : i64} {
  func.func @_gated_attn_kernel(%arg0: i32, %arg1: memref<32x1024xf32, #tpu.memory_space<vmem>>, %arg2: memref<1024x512xf32, #tpu.memory_space<vmem>>, %arg3: memref<1x512xf32, #tpu.memory_space<vmem>>, %arg4: memref<8x256xf32, #tpu.memory_space<vmem>>, %arg5: memref<8x1xf32, #tpu.memory_space<vmem>>, %arg6: memref<8x32xf32, #tpu.memory_space<vmem>>) attributes {dimension_semantics = [#tpu.dimension_semantics<parallel>], iteration_bounds = array<i64: 1>, scalar_prefetch = 0 : i64, scratch_operands = 0 : i64, tpu.core_type = #tpu.core_type<tc>, window_params = [{transform_indices = @transform_0, window_bounds = array<i64: 32, 1024>}, {pipeline_mode = #tpu.pipeline_mode<synchronous>, transform_indices = @transform_1, window_bounds = array<i64: 1024, 512>}, {pipeline_mode = #tpu.pipeline_mode<synchronous>, transform_indices = @transform_2, window_bounds = array<i64: 1, 512>}, {pipeline_mode = #tpu.pipeline_mode<synchronous>, transform_indices = @transform_3, window_bounds = array<i64: 8, 256>}, {pipeline_mode = #tpu.pipeline_mode<synchronous>, transform_indices = @transform_4, window_bounds = array<i64: 8, 1>}, {transform_indices = @transform_5, window_bounds = array<i64: 8, 32>}]} {
    %c0 = arith.constant 0 : index
    %c0_0 = arith.constant 0 : index
    %0 = vector.load %arg1[%c0, %c0_0] : memref<32x1024xf32, #tpu.memory_space<vmem>>, vector<32x1024xf32>
    %c0_1 = arith.constant 0 : index
    %c0_2 = arith.constant 0 : index
    %1 = vector.load %arg2[%c0_1, %c0_2] : memref<1024x512xf32, #tpu.memory_space<vmem>>, vector<1024x512xf32>
    %cst = arith.constant dense<0.000000e+00> : vector<32x512xf32>
    %2 = tpu.matmul %0, %1, %cst {dimension_numbers = #tpu.dot_dimension_numbers<[1], [0], [0], [1], [0, 0, 1, 1], [], []>} : vector<32x1024xf32>, vector<1024x512xf32>, vector<32x512xf32> -> vector<32x512xf32>
    %c0_3 = arith.constant 0 : index
    %c0_4 = arith.constant 0 : index
    %3 = vector.load %arg3[%c0_3, %c0_4] : memref<1x512xf32, #tpu.memory_space<vmem>>, vector<1x512xf32>
    %4 = vector.broadcast %3 : vector<1x512xf32> to vector<32x512xf32>
    %5 = arith.addf %2, %4 : vector<32x512xf32>
    %6 = vector.extract_strided_slice %5 {offsets = [0, 0], sizes = [32, 256], strides = [1, 1]} : vector<32x512xf32> to vector<32x256xf32>
    %7 = math.tanh %6 : vector<32x256xf32>
    %8 = vector.extract_strided_slice %5 {offsets = [0, 256], sizes = [32, 256], strides = [1, 1]} : vector<32x512xf32> to vector<32x256xf32>
    %9 = arith.negf %8 : vector<32x256xf32>
    %10 = math.exp %9 : vector<32x256xf32>
    %cst_5 = arith.constant 1.000000e+00 : f32
    %11 = vector.broadcast %cst_5 : f32 to vector<32x256xf32>
    %12 = arith.addf %11, %10 : vector<32x256xf32>
    %13 = arith.divf %11, %12 : vector<32x256xf32>
    %14 = arith.mulf %7, %13 : vector<32x256xf32>
    %c0_6 = arith.constant 0 : index
    %c0_7 = arith.constant 0 : index
    %15 = vector.load %arg4[%c0_6, %c0_7] : memref<8x256xf32, #tpu.memory_space<vmem>>, vector<8x256xf32>
    %cst_8 = arith.constant dense<0.000000e+00> : vector<8x32xf32>
    %16 = tpu.matmul %15, %14, %cst_8 {dimension_numbers = #tpu.dot_dimension_numbers<[1], [1], [0], [0], [0, 0, 1, 0], [], []>} : vector<8x256xf32>, vector<32x256xf32>, vector<8x32xf32> -> vector<8x32xf32>
    %c0_9 = arith.constant 0 : index
    %c0_10 = arith.constant 0 : index
    %17 = vector.load %arg5[%c0_9, %c0_10] : memref<8x1xf32, #tpu.memory_space<vmem>>, vector<8x1xf32>
    %18 = vector.broadcast %17 : vector<8x1xf32> to vector<8x32xf32>
    %19 = arith.addf %16, %18 : vector<8x32xf32>
    %c0_11 = arith.constant 0 : index
    %c0_12 = arith.constant 0 : index
    %20 = vector.load %arg6[%c0_11, %c0_12] : memref<8x32xf32, #tpu.memory_space<vmem>>, vector<8x32xf32>
    tpu.vector_store %arg6[%c0_11, %c0_12], %19 {strides = array<i32>} : memref<8x32xf32, #tpu.memory_space<vmem>>, vector<8x32xf32>,
    return
  }
  func.func @transform_0(%arg0: i32) -> (i32, i32) {
    %c0_i32 = arith.constant 0 : i32
    %c0_i32_0 = arith.constant 0 : i32
    return %arg0, %c0_i32 : i32, i32
  }
  func.func @transform_1(%arg0: i32) -> (i32, i32) {
    %c0_i32 = arith.constant 0 : i32
    %c0_i32_0 = arith.constant 0 : i32
    %c0_i32_1 = arith.constant 0 : i32
    return %c0_i32, %c0_i32_0 : i32, i32
  }
  func.func @transform_2(%arg0: i32) -> (i32, i32) {
    %c0_i32 = arith.constant 0 : i32
    %c0_i32_0 = arith.constant 0 : i32
    %c0_i32_1 = arith.constant 0 : i32
    return %c0_i32, %c0_i32_0 : i32, i32
  }
  func.func @transform_3(%arg0: i32) -> (i32, i32) {
    %c0_i32 = arith.constant 0 : i32
    %c0_i32_0 = arith.constant 0 : i32
    %c0_i32_1 = arith.constant 0 : i32
    return %c0_i32, %c0_i32_0 : i32, i32
  }
  func.func @transform_4(%arg0: i32) -> (i32, i32) {
    %c0_i32 = arith.constant 0 : i32
    %c0_i32_0 = arith.constant 0 : i32
    %c0_i32_1 = arith.constant 0 : i32
    return %c0_i32, %c0_i32_0 : i32, i32
  }
  func.func @transform_5(%arg0: i32) -> (i32, i32) {
    %c0_i32 = arith.constant 0 : i32
    %c0_i32_0 = arith.constant 0 : i32
    return %c0_i32, %arg0 : i32, i32
  }
}

</mosaic_0001>

<bundles_post_ra>
// kernel: dattn_net_gated.1
= control target key start
LH: loop header
LB: loop body
LE: loop exit
PB: predicated region body
PF: predicated region fallthrough
CT: control target
= control target key end

     0   :  { %s4107_s1 = inlined_call_operand.vmem [shape: f32[1024,512], index: 1, kind: input, shape index: {}]   ;;  %s4108_s0 = inlined_call_operand.vmem [shape: f32[32,1024], index: 0, kind: input, shape index: {}]   ;;  %s4109_s2 = inlined_call_operand.vmem [shape: f32[1,512], index: 2, kind: input, shape index: {}]   ;;  %s4110_s3 = inlined_call_operand.vmem [shape: f32[8,256], index: 3, kind: input, shape index: {}]   ;;  %s4111_s4 = inlined_call_operand.vmem [shape: f32[8,1], index: 4, kind: input, shape index: {}]   ;;  %s4112_s5 = inlined_call_operand.vmem [shape: f32[8,32], index: 5, kind: output, shape index: {}]  }
   0x1   :  { %v112_v0 = vld [vmem:[%s4107_s1 + $0x1e0] sm:$0xff]  ;;  %v2040_v63 = vld [vmem:[%s4108_s0 + $0x10] sm:$0xff] }
   0x2   :  { %v240_v1 = vld [vmem:[%s4107_s1 + $0x5e0] sm:$0xff]  ;;  %574 = vmatpush.msra.mxu0 %v112_v0 }
   0x3   :  { %v108_v2 = vld [vmem:[%s4107_s1 + $0x1c0] sm:$0xff]  ;;  %632 = vmatpush.msra.mxu2 %v240_v1 }
   0x4   :  { %v176_v3 = vld [vmem:[%s4107_s1 + $0x3e0] sm:$0xff]  ;;  %575 = vmatpush.msra.mxu0 %v108_v2 }
   0x5   :  { %v236_v4 = vld [vmem:[%s4107_s1 + $0x5c0] sm:$0xff]  ;;  %603 = vmatpush.msra.mxu1 %v176_v3 }
   0x6   :  { %v304_v5 = vld [vmem:[%s4107_s1 + $0x7e0] sm:$0xff]  ;;  %633 = vmatpush.msra.mxu2 %v236_v4  ;;  %v2059_v4 = vld [vmem:[%s4108_s0 + $0x8] sm:$0xff] }
   0x7   :  { %661 = vmatpush.msra.mxu3 %v304_v5  ;;  %v104_v6 = vld [vmem:[%s4107_s1 + $0x1a0] sm:$0xff]  ;;  %v2064_v5 = vld [vmem:[%s4108_s0 + $0x18] sm:$0xff] }
   0x8   :  { %v172_v7 = vld [vmem:[%s4107_s1 + $0x3c0] sm:$0xff]  ;;  %576 = vmatpush.msra.mxu0 %v104_v6 }
   0x9   :  { %v232_v8 = vld [vmem:[%s4107_s1 + $0x5a0] sm:$0xff]  ;;  %604 = vmatpush.msra.mxu1 %v172_v7 }
   0xa   :  { %v300_v9 = vld [vmem:[%s4107_s1 + $0x7c0] sm:$0xff]  ;;  %634 = vmatpush.msra.mxu2 %v232_v8 }
   0xb   :  { %v168_v10 = vld [vmem:[%s4107_s1 + $0x3a0] sm:$0xff]  ;;  %662 = vmatpush.msra.mxu3 %v300_v9 }
   0xc   :  { %v100_v11 = vld [vmem:[%s4107_s1 + $0x180] sm:$0xff]  ;;  %605 = vmatpush.msra.mxu1 %v168_v10 }
   0xd   :  { %v228_v12 = vld [vmem:[%s4107_s1 + $0x580] sm:$0xff]  ;;  %577 = vmatpush.msra.mxu0 %v100_v11 }
   0xe   :  { %v296_v13 = vld [vmem:[%s4107_s1 + $0x7a0] sm:$0xff]  ;;  %635 = vmatpush.msra.mxu2 %v228_v12 }
   0xf   :  { %v164_v14 = vld [vmem:[%s4107_s1 + $0x380] sm:$0xff]  ;;  %663 = vmatpush.msra.mxu3 %v296_v13 }
  0x10   :  { %v292_v15 = vld [vmem:[%s4107_s1 + $0x780] sm:$0xff]  ;;  %606 = vmatpush.msra.mxu1 %v164_v14 }
  0x11   :  { %v96_v16 = vld [vmem:[%s4107_s1 + $0x160] sm:$0xff]  ;;  %664 = vmatpush.msra.mxu3 %v292_v15 }
  0x12   :  { %v224_v17 = vld [vmem:[%s4107_s1 + $0x560] sm:$0xff]  ;;  %578 = vmatpush.msra.mxu0 %v96_v16 }
  0x13   :  { %v160_v18 = vld [vmem:[%s4107_s1 + $0x360] sm:$0xff]  ;;  %636 = vmatpush.msra.mxu2 %v224_v17 }
  0x14   :  { %v288_v19 = vld [vmem:[%s4107_s1 + $0x760] sm:$0xff]  ;;  %607 = vmatpush.msra.mxu1 %v160_v18 }
  0x15   :  { %v92_v20 = vld [vmem:[%s4107_s1 + $0x140] sm:$0xff]  ;;  %665 = vmatpush.msra.mxu3 %v288_v19  ;;  %v2112_v19 = vld [vmem:[%s4108_s0 + $0x50] sm:$0xff] }
  0x16   :  { %v220_v21 = vld [vmem:[%s4107_s1 + $0x540] sm:$0xff]  ;;  %579 = vmatpush.msra.mxu0 %v92_v20 }
  0x17   :  { %v156_v22 = vld [vmem:[%s4107_s1 + $0x340] sm:$0xff]  ;;  %637 = vmatpush.msra.mxu2 %v220_v21 }
  0x18   :  { %v284_v23 = vld [vmem:[%s4107_s1 + $0x740] sm:$0xff]  ;;  %608 = vmatpush.msra.mxu1 %v156_v22 }
  0x19   :  { %v88_v24 = vld [vmem:[%s4107_s1 + $0x120] sm:$0xff]  ;;  %666 = vmatpush.msra.mxu3 %v284_v23 }
  0x1a   :  { %v216_v25 = vld [vmem:[%s4107_s1 + $0x520] sm:$0xff]  ;;  %580 = vmatpush.msra.mxu0 %v88_v24  ;;  %v2131_v24 = vld [vmem:[%s4108_s0 + $0x48] sm:$0xff] }
  0x1b   :  { %v152_v26 = vld [vmem:[%s4107_s1 + $0x320] sm:$0xff]  ;;  %638 = vmatpush.msra.mxu2 %v216_v25  ;;  %v2136_v25 = vld [vmem:[%s4108_s0 + $0x58] sm:$0xff] }
  0x1c   :  { %v280_v27 = vld [vmem:[%s4107_s1 + $0x720] sm:$0xff]  ;;  %609 = vmatpush.msra.mxu1 %v152_v26 }
  0x1d   :  { %v84_v28 = vld [vmem:[%s4107_s1 + $0x100] sm:$0xff]  ;;  %667 = vmatpush.msra.mxu3 %v280_v27 }
  0x1e   :  { %v212_v29 = vld [vmem:[%s4107_s1 + $0x500] sm:$0xff]  ;;  %581 = vmatpush.msra.mxu0 %v84_v28 }
  0x1f   :  { %v148_v30 = vld [vmem:[%s4107_s1 + $0x300] sm:$0xff]  ;;  %639 = vmatpush.msra.mxu2 %v212_v29 }
  0x20   :  { %v276_v31 = vld [vmem:[%s4107_s1 + $0x700] sm:$0xff]  ;;  %610 = vmatpush.msra.mxu1 %v148_v30 }
  0x21   :  { %v80_v32 = vld [vmem:[%s4107_s1 + $0xe0] sm:$0xff]  ;;  %668 = vmatpush.msra.mxu3 %v276_v31 }
  0x22   :  { %v208_v33 = vld [vmem:[%s4107_s1 + $0x4e0] sm:$0xff]  ;;  %582 = vmatpush.msra.mxu0 %v80_v32 }
  0x23   :  { %v144_v34 = vld [vmem:[%s4107_s1 + $0x2e0] sm:$0xff]  ;;  %640 = vmatpush.msra.mxu2 %v208_v33 }
  0x24   :  { %v272_v35 = vld [vmem:[%s4107_s1 + $0x6e0] sm:$0xff]  ;;  %611 = vmatpush.msra.mxu1 %v144_v34 }
  0x25   :  { %v76_v36 = vld [vmem:[%s4107_s1 + $0xc0] sm:$0xff]  ;;  %669 = vmatpush.msra.mxu3 %v272_v35 }
  0x26   :  { %v204_v37 = vld [vmem:[%s4107_s1 + $0x4c0] sm:$0xff]  ;;  %583 = vmatpush.msra.mxu0 %v76_v36 }
  0x27   :  { %v140_v38 = vld [vmem:[%s4107_s1 + $0x2c0] sm:$0xff]  ;;  %641 = vmatpush.msra.mxu2 %v204_v37 }
  0x28   :  { %v268_v39 = vld [vmem:[%s4107_s1 + $0x6c0] sm:$0xff]  ;;  %612 = vmatpush.msra.mxu1 %v140_v38 }
  0x29   :  { %v72_v40 = vld [vmem:[%s4107_s1 + $0xa0] sm:$0xff]  ;;  %670 = vmatpush.msra.mxu3 %v268_v39  ;;  %v2184_v39 = vld [vmem:[%s4108_s0 + $0x90] sm:$0xff] }
  0x2a   :  { %v200_v41 = vld [vmem:[%s4107_s1 + $0x4a0] sm:$0xff]  ;;  %584 = vmatpush.msra.mxu0 %v72_v40 }
  0x2b   :  { %v136_v42 = vld [vmem:[%s4107_s1 + $0x2a0] sm:$0xff]  ;;  %642 = vmatpush.msra.mxu2 %v200_v41 }
  0x2c   :  { %v264_v43 = vld [vmem:[%s4107_s1 + $0x6a0] sm:$0xff]  ;;  %613 = vmatpush.msra.mxu1 %v136_v42 }
  0x2d   :  { %v68_v44 = vld [vmem:[%s4107_s1 + $0x80] sm:$0xff]  ;;  %671 = vmatpush.msra.mxu3 %v264_v43 }
  0x2e   :  { %v196_v45 = vld [vmem:[%s4107_s1 + $0x480] sm:$0xff]  ;;  %585 = vmatpush.msra.mxu0 %v68_v44  ;;  %v2203_v44 = vld [vmem:[%s4108_s0 + $0x88] sm:$0xff] }
  0x2f   :  { %v132_v46 = vld [vmem:[%s4107_s1 + $0x280] sm:$0xff]  ;;  %643 = vmatpush.msra.mxu2 %v196_v45  ;;  %v2208_v45 = vld [vmem:[%s4108_s0 + $0x98] sm:$0xff] }
  0x30   :  { %v260_v47 = vld [vmem:[%s4107_s1 + $0x680] sm:$0xff]  ;;  %614 = vmatpush.msra.mxu1 %v132_v46 }
  0x31   :  { %v64_v48 = vld [vmem:[%s4107_s1 + $0x60] sm:$0xff]  ;;  %672 = vmatpush.msra.mxu3 %v260_v47 }
  0x32   :  { %v192_v49 = vld [vmem:[%s4107_s1 + $0x460] sm:$0xff]  ;;  %586 = vmatpush.msra.mxu0 %v64_v48 }
  0x33   :  { %v128_v50 = vld [vmem:[%s4107_s1 + $0x260] sm:$0xff]  ;;  %644 = vmatpush.msra.mxu2 %v192_v49 }
  0x34   :  { %v256_v51 = vld [vmem:[%s4107_s1 + $0x660] sm:$0xff]  ;;  %615 = vmatpush.msra.mxu1 %v128_v50 }
  0x35   :  { %v60_v52 = vld [vmem:[%s4107_s1 + $0x40] sm:$0xff]  ;;  %673 = vmatpush.msra.mxu3 %v256_v51 }
  0x36   :  { %v188_v53 = vld [vmem:[%s4107_s1 + $0x440] sm:$0xff]  ;;  %587 = vmatpush.msra.mxu0 %v60_v52 }
  0x37   :  { %v124_v54 = vld [vmem:[%s4107_s1 + $0x240] sm:$0xff]  ;;  %645 = vmatpush.msra.mxu2 %v188_v53 }
  0x38   :  { %v252_v55 = vld [vmem:[%s4107_s1 + $0x640] sm:$0xff]  ;;  %616 = vmatpush.msra.mxu1 %v124_v54 }
  0x39   :  { %v56_v56 = vld [vmem:[%s4107_s1 + $0x20] sm:$0xff]  ;;  %674 = vmatpush.msra.mxu3 %v252_v55 }
  0x3a   :  { %v184_v57 = vld [vmem:[%s4107_s1 + $0x420] sm:$0xff]  ;;  %588 = vmatpush.msra.mxu0 %v56_v56 }
  0x3b   :  { %v120_v58 = vld [vmem:[%s4107_s1 + $0x220] sm:$0xff]  ;;  %646 = vmatpush.msra.mxu2 %v184_v57 }
  0x3c   :  { %v248_v59 = vld [vmem:[%s4107_s1 + $0x620] sm:$0xff]  ;;  %617 = vmatpush.msra.mxu1 %v120_v58 }
  0x3d   :  { %v52_v60 = vld [vmem:[%s4107_s1] sm:$0xff]  ;;  %675 = vmatpush.msra.mxu3 %v248_v59  ;;  %v2256_v59 = vld [vmem:[%s4108_s0 + $0xd0] sm:$0xff] }
  0x3e   :  { %v180_v61 = vld [vmem:[%s4107_s1 + $0x400] sm:$0xff]  ;;  %589 = vmatpush.msra.mxu0 %v52_v60 }
  0x3f   :  { %v2035_v62 = vld [vmem:[%s4108_s0] sm:$0xff]  ;;  %647 = vmatpush.msra.mxu2 %v180_v61 }
  0x40   :  { %v116_v0 = vld [vmem:[%s4107_s1 + $0x200] sm:$0xff]  ;;  %590 = vmatmul.f32.vlgmr.msra.gmra.mxu0 %v2035_v62  ;;  %648 = vmatmul.f32.vlgmr.msra.gmra.mxu2 %v2040_v63 }
  0x41   :  { %v244_v1 = vld [vmem:[%s4107_s1 + $0x600] sm:$0xff]  ;;  %618 = vmatpush.msra.mxu1 %v116_v0 }
  0x42   :  { %v368_v2 = vld [vmem:[%s4107_s1 + $0x9e0] sm:$0xff]  ;;  %676 = vmatpush.msra.mxu3 %v244_v1  ;;  %619 = vmatmul.f32.vlgmr.msra.gmra.mxu1 %v2059_v4 }
  0x43   :  { %v496_v3 = vld [vmem:[%s4107_s1 + $0xde0] sm:$0xff]  ;;  %690 = vmatpush.msrb.mxu0 %v368_v2  ;;  %677 = vmatmul.f32.vlgmr.msra.gmra.mxu3 %v2064_v5  ;;  %v2275_v2 = vld [vmem:[%s4108_s0 + $0xc8] sm:$0xff] }
  0x44   :  { %v364_v6 = vld [vmem:[%s4107_s1 + $0x9c0] sm:$0xff]  ;;  %748 = vmatpush.msrb.mxu2 %v496_v3  ;;  %v2280_v3 = vld [vmem:[%s4108_s0 + $0xd8] sm:$0xff] }
  0x45   :  { %v432_v7 = vld [vmem:[%s4107_s1 + $0xbe0] sm:$0xff]  ;;  %691 = vmatpush.msrb.mxu0 %v364_v6 }
  0x46   :  { %v492_v8 = vld [vmem:[%s4107_s1 + $0xdc0] sm:$0xff]  ;;  %719 = vmatpush.msrb.mxu1 %v432_v7 }
  0x47   :  { %v560_v9 = vld [vmem:[%s4107_s1 + $0xfe0] sm:$0xff]  ;;  %749 = vmatpush.msrb.mxu2 %v492_v8 }
  0x48   :  { %v360_v10 = vld [vmem:[%s4107_s1 + $0x9a0] sm:$0xff]  ;;  %777 = vmatpush.msrb.mxu3 %v560_v9  ;;  %651 = vmatmul.f32.gmra.mxu2 %v2112_v19 }
  0x49   :  { %v428_v11 = vld [vmem:[%s4107_s1 + $0xbc0] sm:$0xff]  ;;  %692 = vmatpush.msrb.mxu0 %v360_v10 }
  0x4a   :  { %v488_v12 = vld [vmem:[%s4107_s1 + $0xda0] sm:$0xff]  ;;  %720 = vmatpush.msrb.mxu1 %v428_v11 }
  0x4b   :  { %v556_v13 = vld [vmem:[%s4107_s1 + $0xfc0] sm:$0xff]  ;;  %750 = vmatpush.msrb.mxu2 %v488_v12  ;;  %622 = vmatmul.f32.gmra.mxu1 %v2131_v24 }
  0x4c   :  { %v356_v14 = vld [vmem:[%s4107_s1 + $0x980] sm:$0xff]  ;;  %778 = vmatpush.msrb.mxu3 %v556_v13 }
  0x4d   :  { %v424_v15 = vld [vmem:[%s4107_s1 + $0xba0] sm:$0xff]  ;;  %693 = vmatpush.msrb.mxu0 %v356_v14  ;;  %680 = vmatmul.f32.gmra.mxu3 %v2136_v25 }
  0x4e   :  { %v484_v16 = vld [vmem:[%s4107_s1 + $0xd80] sm:$0xff]  ;;  %721 = vmatpush.msrb.mxu1 %v424_v15 }
  0x4f   :  { %v552_v17 = vld [vmem:[%s4107_s1 + $0xfa0] sm:$0xff]  ;;  %751 = vmatpush.msrb.mxu2 %v484_v16 }
  0x50   :  { %v2107_v18 = vld [vmem:[%s4108_s0 + $0x40] sm:$0xff]  ;;  %779 = vmatpush.msrb.mxu3 %v552_v17  ;;  %654 = vmatmul.f32.gmra.mxu2 %v2184_v39 }
  0x51   :  { %v352_v20 = vld [vmem:[%s4107_s1 + $0x960] sm:$0xff]  ;;  %593 = vmatmul.f32.gmra.mxu0 %v2107_v18 }
  0x52   :  { %v420_v21 = vld [vmem:[%s4107_s1 + $0xb80] sm:$0xff]  ;;  %694 = vmatpush.msrb.mxu0 %v352_v20 }
  0x53   :  { %v480_v22 = vld [vmem:[%s4107_s1 + $0xd60] sm:$0xff]  ;;  %722 = vmatpush.msrb.mxu1 %v420_v21  ;;  %v2328_v21 = vld [vmem:[%s4108_s0 + $0x30] sm:$0xff] }
  0x54   :  { %v548_v23 = vld [vmem:[%s4107_s1 + $0xf80] sm:$0xff]  ;;  %752 = vmatpush.msrb.mxu2 %v480_v22  ;;  %625 = vmatmul.f32.gmra.mxu1 %v2203_v44 }
  0x55   :  { %v348_v26 = vld [vmem:[%s4107_s1 + $0x940] sm:$0xff]  ;;  %780 = vmatpush.msrb.mxu3 %v548_v23 }
  0x56   :  { %v416_v27 = vld [vmem:[%s4107_s1 + $0xb60] sm:$0xff]  ;;  %695 = vmatpush.msrb.mxu0 %v348_v26  ;;  %683 = vmatmul.f32.gmra.mxu3 %v2208_v45  ;;  %v113_v26 = vld [vmem:[%s4107_s1 + $0x1e8] sm:$0xff] }
  0x57   :  { %v476_v28 = vld [vmem:[%s4107_s1 + $0xd40] sm:$0xff]  ;;  %723 = vmatpush.msrb.mxu1 %v416_v27  ;;  %v241_v27 = vld [vmem:[%s4107_s1 + $0x5e8] sm:$0xff] }
  0x58   :  { %v544_v29 = vld [vmem:[%s4107_s1 + $0xf60] sm:$0xff]  ;;  %753 = vmatpush.msrb.mxu2 %v476_v28  ;;  %v2347_v28 = vld [vmem:[%s4108_s0 + $0x28] sm:$0xff] }
  0x59   :  { %v344_v30 = vld [vmem:[%s4107_s1 + $0x920] sm:$0xff]  ;;  %781 = vmatpush.msrb.mxu3 %v544_v29  ;;  %657 = vmatmul.f32.gmra.mxu2 %v2256_v59  ;;  %v2352_v29 = vld [vmem:[%s4108_s0 + $0x38] sm:$0xff] }
  0x5a   :  { %v412_v31 = vld [vmem:[%s4107_s1 + $0xb40] sm:$0xff]  ;;  %696 = vmatpush.msrb.mxu0 %v344_v30  ;;  %v109_v30 = vld [vmem:[%s4107_s1 + $0x1c8] sm:$0xff] }
  0x5b   :  { %v472_v32 = vld [vmem:[%s4107_s1 + $0xd20] sm:$0xff]  ;;  %724 = vmatpush.msrb.mxu1 %v412_v31  ;;  %v177_v31 = vld [vmem:[%s4107_s1 + $0x3e8] sm:$0xff] }
  0x5c   :  { %v540_v33 = vld [vmem:[%s4107_s1 + $0xf40] sm:$0xff]  ;;  %754 = vmatpush.msrb.mxu2 %v472_v32  ;;  %628 = vmatmul.f32.gmra.mxu1 %v2275_v2  ;;  %v237_v32 = vld [vmem:[%s4107_s1 + $0x5c8] sm:$0xff] }
  0x5d   :  { %v340_v34 = vld [vmem:[%s4107_s1 + $0x900] sm:$0xff]  ;;  %782 = vmatpush.msrb.mxu3 %v540_v33  ;;  %v305_v33 = vld [vmem:[%s4107_s1 + $0x7e8] sm:$0xff] }
  0x5e   :  { %v408_v35 = vld [vmem:[%s4107_s1 + $0xb20] sm:$0xff]  ;;  %697 = vmatpush.msrb.mxu0 %v340_v34  ;;  %686 = vmatmul.f32.gmra.mxu3 %v2280_v3  ;;  %v105_v34 = vld [vmem:[%s4107_s1 + $0x1a8] sm:$0xff] }
  0x5f   :  { %v468_v36 = vld [vmem:[%s4107_s1 + $0xd00] sm:$0xff]  ;;  %725 = vmatpush.msrb.mxu1 %v408_v35  ;;  %v173_v35 = vld [vmem:[%s4107_s1 + $0x3c8] sm:$0xff] }
  0x60   :  { %v536_v37 = vld [vmem:[%s4107_s1 + $0xf20] sm:$0xff]  ;;  %755 = vmatpush.msrb.mxu2 %v468_v36  ;;  %v233_v36 = vld [vmem:[%s4107_s1 + $0x5a8] sm:$0xff] }
  0x61   :  { %v2179_v38 = vld [vmem:[%s4108_s0 + $0x80] sm:$0xff]  ;;  %783 = vmatpush.msrb.mxu3 %v536_v37  ;;  %v301_v37 = vld [vmem:[%s4107_s1 + $0x7c8] sm:$0xff] }
  0x62   :  { %v336_v40 = vld [vmem:[%s4107_s1 + $0x8e0] sm:$0xff]  ;;  %596 = vmatmul.f32.gmra.mxu0 %v2179_v38 }
  0x63   :  { %v404_v41 = vld [vmem:[%s4107_s1 + $0xb00] sm:$0xff]  ;;  %698 = vmatpush.msrb.mxu0 %v336_v40  ;;  %v101_v40 = vld [vmem:[%s4107_s1 + $0x188] sm:$0xff] }
  0x64   :  { %v464_v42 = vld [vmem:[%s4107_s1 + $0xce0] sm:$0xff]  ;;  %726 = vmatpush.msrb.mxu1 %v404_v41  ;;  %v169_v41 = vld [vmem:[%s4107_s1 + $0x3a8] sm:$0xff] }
  0x65   :  { %v532_v43 = vld [vmem:[%s4107_s1 + $0xf00] sm:$0xff]  ;;  %756 = vmatpush.msrb.mxu2 %v464_v42  ;;  %v229_v42 = vld [vmem:[%s4107_s1 + $0x588] sm:$0xff] }
  0x66   :  { %v332_v46 = vld [vmem:[%s4107_s1 + $0x8c0] sm:$0xff]  ;;  %784 = vmatpush.msrb.mxu3 %v532_v43  ;;  %v297_v43 = vld [vmem:[%s4107_s1 + $0x7a8] sm:$0xff] }
  0x67   :  { %v400_v47 = vld [vmem:[%s4107_s1 + $0xae0] sm:$0xff]  ;;  %699 = vmatpush.msrb.mxu0 %v332_v46 }
  0x68   :  { %v460_v48 = vld [vmem:[%s4107_s1 + $0xcc0] sm:$0xff]  ;;  %727 = vmatpush.msrb.mxu1 %v400_v47  ;;  %v2400_v47 = vld [vmem:[%s4108_s0 + $0x70] sm:$0xff] }
  0x69   :  { %v528_v49 = vld [vmem:[%s4107_s1 + $0xee0] sm:$0xff]  ;;  %757 = vmatpush.msrb.mxu2 %v460_v48  ;;  %v97_v48 = vld [vmem:[%s4107_s1 + $0x168] sm:$0xff] }
  0x6a   :  { %v328_v50 = vld [vmem:[%s4107_s1 + $0x8a0] sm:$0xff]  ;;  %785 = vmatpush.msrb.mxu3 %v528_v49  ;;  %v165_v49 = vld [vmem:[%s4107_s1 + $0x388] sm:$0xff] }
  0x6b   :  { %v396_v51 = vld [vmem:[%s4107_s1 + $0xac0] sm:$0xff]  ;;  %700 = vmatpush.msrb.mxu0 %v328_v50  ;;  %v225_v50 = vld [vmem:[%s4107_s1 + $0x568] sm:$0xff] }
  0x6c   :  { %v456_v52 = vld [vmem:[%s4107_s1 + $0xca0] sm:$0xff]  ;;  %728 = vmatpush.msrb.mxu1 %v396_v51  ;;  %v293_v51 = vld [vmem:[%s4107_s1 + $0x788] sm:$0xff] }
  0x6d   :  { %v524_v53 = vld [vmem:[%s4107_s1 + $0xec0] sm:$0xff]  ;;  %758 = vmatpush.msrb.mxu2 %v456_v52  ;;  %v2419_v52 = vld [vmem:[%s4108_s0 + $0x68] sm:$0xff] }
  0x6e   :  { %v324_v54 = vld [vmem:[%s4107_s1 + $0x880] sm:$0xff]  ;;  %786 = vmatpush.msrb.mxu3 %v524_v53  ;;  %v2424_v53 = vld [vmem:[%s4108_s0 + $0x78] sm:$0xff] }
  0x6f   :  { %v392_v55 = vld [vmem:[%s4107_s1 + $0xaa0] sm:$0xff]  ;;  %701 = vmatpush.msrb.mxu0 %v324_v54  ;;  %v93_v54 = vld [vmem:[%s4107_s1 + $0x148] sm:$0xff] }
  0x70   :  { %v452_v56 = vld [vmem:[%s4107_s1 + $0xc80] sm:$0xff]  ;;  %729 = vmatpush.msrb.mxu1 %v392_v55  ;;  %v161_v55 = vld [vmem:[%s4107_s1 + $0x368] sm:$0xff] }
  0x71   :  { %v520_v57 = vld [vmem:[%s4107_s1 + $0xea0] sm:$0xff]  ;;  %759 = vmatpush.msrb.mxu2 %v452_v56  ;;  %v221_v56 = vld [vmem:[%s4107_s1 + $0x548] sm:$0xff] }
  0x72   :  { %v2251_v58 = vld [vmem:[%s4108_s0 + $0xc0] sm:$0xff]  ;;  %787 = vmatpush.msrb.mxu3 %v520_v57  ;;  %v289_v57 = vld [vmem:[%s4107_s1 + $0x768] sm:$0xff] }
  0x73   :  { %v320_v60 = vld [vmem:[%s4107_s1 + $0x860] sm:$0xff]  ;;  %599 = vmatmul.f32.gmra.mxu0 %v2251_v58 }
  0x74   :  { %v388_v61 = vld [vmem:[%s4107_s1 + $0xa80] sm:$0xff]  ;;  %702 = vmatpush.msrb.mxu0 %v320_v60  ;;  %v89_v60 = vld [vmem:[%s4107_s1 + $0x128] sm:$0xff] }
  0x75   :  { %v448_v0 = vld [vmem:[%s4107_s1 + $0xc60] sm:$0xff]  ;;  %730 = vmatpush.msrb.mxu1 %v388_v61  ;;  %v157_v61 = vld [vmem:[%s4107_s1 + $0x348] sm:$0xff] }
  0x76   :  { %v516_v1 = vld [vmem:[%s4107_s1 + $0xe80] sm:$0xff]  ;;  %760 = vmatpush.msrb.mxu2 %v448_v0  ;;  %v217_v0 = vld [vmem:[%s4107_s1 + $0x528] sm:$0xff] }
  0x77   :  { %v316_v6 = vld [vmem:[%s4107_s1 + $0x840] sm:$0xff]  ;;  %788 = vmatpush.msrb.mxu3 %v516_v1  ;;  %v285_v1 = vld [vmem:[%s4107_s1 + $0x748] sm:$0xff] }
  0x78   :  { %v384_v7 = vld [vmem:[%s4107_s1 + $0xa60] sm:$0xff]  ;;  %703 = vmatpush.msrb.mxu0 %v316_v6  ;;  %v85_v6 = vld [vmem:[%s4107_s1 + $0x108] sm:$0xff] }
  0x79   :  { %v444_v8 = vld [vmem:[%s4107_s1 + $0xc40] sm:$0xff]  ;;  %731 = vmatpush.msrb.mxu1 %v384_v7  ;;  %v153_v7 = vld [vmem:[%s4107_s1 + $0x328] sm:$0xff] }
  0x7a   :  { %v512_v9 = vld [vmem:[%s4107_s1 + $0xe60] sm:$0xff]  ;;  %761 = vmatpush.msrb.mxu2 %v444_v8  ;;  %v213_v8 = vld [vmem:[%s4107_s1 + $0x508] sm:$0xff] }
  0x7b   :  { %v312_v10 = vld [vmem:[%s4107_s1 + $0x820] sm:$0xff]  ;;  %789 = vmatpush.msrb.mxu3 %v512_v9  ;;  %v281_v9 = vld [vmem:[%s4107_s1 + $0x728] sm:$0xff] }
  0x7c   :  { %v380_v11 = vld [vmem:[%s4107_s1 + $0xa40] sm:$0xff]  ;;  %704 = vmatpush.msrb.mxu0 %v312_v10 }
  0x7d   :  { %v440_v12 = vld [vmem:[%s4107_s1 + $0xc20] sm:$0xff]  ;;  %732 = vmatpush.msrb.mxu1 %v380_v11  ;;  %v2472_v11 = vld [vmem:[%s4108_s0 + $0xb0] sm:$0xff] }
  0x7e   :  { %v508_v13 = vld [vmem:[%s4107_s1 + $0xe40] sm:$0xff]  ;;  %762 = vmatpush.msrb.mxu2 %v440_v12  ;;  %v81_v12 = vld [vmem:[%s4107_s1 + $0xe8] sm:$0xff] }
  0x7f   :  { %v308_v14 = vld [vmem:[%s4107_s1 + $0x800] sm:$0xff]  ;;  %790 = vmatpush.msrb.mxu3 %v508_v13  ;;  %v149_v13 = vld [vmem:[%s4107_s1 + $0x308] sm:$0xff] }
  0x80   :  { %v376_v15 = vld [vmem:[%s4107_s1 + $0xa20] sm:$0xff]  ;;  %705 = vmatpush.msrb.mxu0 %v308_v14  ;;  %v209_v14 = vld [vmem:[%s4107_s1 + $0x4e8] sm:$0xff] }
  0x81   :  { %v436_v16 = vld [vmem:[%s4107_s1 + $0xc00] sm:$0xff]  ;;  %733 = vmatpush.msrb.mxu1 %v376_v15  ;;  %v277_v15 = vld [vmem:[%s4107_s1 + $0x708] sm:$0xff] }
  0x82   :  { %v504_v17 = vld [vmem:[%s4107_s1 + $0xe20] sm:$0xff]  ;;  %763 = vmatpush.msrb.mxu2 %v436_v16  ;;  %806 = vmatpush.msra.mxu0 %v113_v26  ;;  %v2491_v16 = vld [vmem:[%s4108_s0 + $0xa8] sm:$0xff] }
  0x83   :  { %v2323_v20 = vld [vmem:[%s4108_s0 + $0x20] sm:$0xff]  ;;  %791 = vmatpush.msrb.mxu3 %v504_v17  ;;  %764 = vmatmul.f32.vlgmr.msrb.gmra.mxu2 %v2328_v21  ;;  %v2496_v17 = vld [vmem:[%s4108_s0 + $0xb8] sm:$0xff]  ;;  %v205_v26 = vld [vmem:[%s4107_s1 + $0x4c8] sm:$0xff] }
  0x84   :  { %v372_v22 = vld [vmem:[%s4107_s1 + $0xa00] sm:$0xff]  ;;  %706 = vmatmul.f32.vlgmr.msrb.gmra.mxu0 %v2323_v20  ;;  %864 = vmatpush.msra.mxu2 %v241_v27  ;;  %v273_v27 = vld [vmem:[%s4107_s1 + $0x6e8] sm:$0xff] }
  0x85   :  { %v500_v23 = vld [vmem:[%s4107_s1 + $0xe00] sm:$0xff]  ;;  %734 = vmatpush.msrb.mxu1 %v372_v22  ;;  %807 = vmatpush.msra.mxu0 %v109_v30  ;;  %v77_v22 = vld [vmem:[%s4107_s1 + $0xc8] sm:$0xff] }
  0x86   :  { %792 = vmatpush.msrb.mxu3 %v500_v23  ;;  %735 = vmatmul.f32.vlgmr.msrb.gmra.mxu1 %v2347_v28  ;;  %v2395_v46 = vld [vmem:[%s4108_s0 + $0x60] sm:$0xff]  ;;  %v145_v23 = vld [vmem:[%s4107_s1 + $0x2e8] sm:$0xff] }
  0x87   :  { %793 = vmatmul.f32.vlgmr.msrb.gmra.mxu3 %v2352_v29  ;;  %835 = vmatpush.msra.mxu1 %v177_v31  ;;  %v2467_v10 = vld [vmem:[%s4108_s0 + $0xa0] sm:$0xff]  ;;  %v73_v30 = vld [vmem:[%s4107_s1 + $0xa8] sm:$0xff] }
  0x88   :  { %865 = vmatpush.msra.mxu2 %v237_v32  ;;  %893 = vmatpush.msra.mxu3 %v305_v33  ;;  %v141_v31 = vld [vmem:[%s4107_s1 + $0x2c8] sm:$0xff] }
  0x89   :  { %808 = vmatpush.msra.mxu0 %v105_v34  ;;  %836 = vmatpush.msra.mxu1 %v173_v35  ;;  %v201_v32 = vld [vmem:[%s4107_s1 + $0x4a8] sm:$0xff] }
  0x8a   :  { %866 = vmatpush.msra.mxu2 %v233_v36  ;;  %894 = vmatpush.msra.mxu3 %v301_v37  ;;  %v269_v33 = vld [vmem:[%s4107_s1 + $0x6c8] sm:$0xff] }
  0x8b   :  { %809 = vmatpush.msra.mxu0 %v101_v40  ;;  %837 = vmatpush.msra.mxu1 %v169_v41  ;;  %v69_v34 = vld [vmem:[%s4107_s1 + $0x88] sm:$0xff]  ;;  %v2539_v40 = vld [vmem:[%s4108_s0 + $0xe0] sm:$0xff]  ;;  %v2544_v41 = vld [vmem:[%s4108_s0 + $0xf0] sm:$0xff] }
  0x8c   :  { %867 = vmatpush.msra.mxu2 %v229_v42  ;;  %895 = vmatpush.msra.mxu3 %v297_v43  ;;  %v137_v35 = vld [vmem:[%s4107_s1 + $0x2a8] sm:$0xff] }
  0x8d   :  { %709 = vmatmul.f32.gmra.mxu0 %v2395_v46  ;;  %767 = vmatmul.f32.gmra.mxu2 %v2400_v47  ;;  %v197_v36 = vld [vmem:[%s4107_s1 + $0x488] sm:$0xff] }
  0x8e   :  { %810 = vmatpush.msra.mxu0 %v97_v48  ;;  %838 = vmatpush.msra.mxu1 %v165_v49  ;;  %v265_v37 = vld [vmem:[%s4107_s1 + $0x6a8] sm:$0xff] }
  0x8f   :  { %868 = vmatpush.msra.mxu2 %v225_v50  ;;  %896 = vmatpush.msra.mxu3 %v293_v51  ;;  %v65_v42 = vld [vmem:[%s4107_s1 + $0x68] sm:$0xff]  ;;  %v2568_v51 = vld [vmem:[%s4108_s0 + $0xf8] sm:$0xff] }
  0x90   :  { %738 = vmatmul.f32.gmra.mxu1 %v2419_v52  ;;  %796 = vmatmul.f32.gmra.mxu3 %v2424_v53  ;;  %v133_v43 = vld [vmem:[%s4107_s1 + $0x288] sm:$0xff] }
  0x91   :  { %811 = vmatpush.msra.mxu0 %v93_v54  ;;  %839 = vmatpush.msra.mxu1 %v161_v55  ;;  %v193_v48 = vld [vmem:[%s4107_s1 + $0x468] sm:$0xff] }
  0x92   :  { %869 = vmatpush.msra.mxu2 %v221_v56  ;;  %897 = vmatpush.msra.mxu3 %v289_v57  ;;  %v261_v49 = vld [vmem:[%s4107_s1 + $0x688] sm:$0xff] }
  0x93   :  { %812 = vmatpush.msra.mxu0 %v89_v60  ;;  %840 = vmatpush.msra.mxu1 %v157_v61  ;;  %v2563_v50 = vld [vmem:[%s4108_s0 + $0xe8] sm:$0xff] }
  0x94   :  { %870 = vmatpush.msra.mxu2 %v217_v0  ;;  %898 = vmatpush.msra.mxu3 %v285_v1  ;;  %v61_v54 = vld [vmem:[%s4107_s1 + $0x48] sm:$0xff] }
  0x95   :  { %813 = vmatpush.msra.mxu0 %v85_v6  ;;  %841 = vmatpush.msra.mxu1 %v153_v7  ;;  %v129_v55 = vld [vmem:[%s4107_s1 + $0x268] sm:$0xff] }
  0x96   :  { %871 = vmatpush.msra.mxu2 %v213_v8  ;;  %899 = vmatpush.msra.mxu3 %v281_v9  ;;  %v189_v56 = vld [vmem:[%s4107_s1 + $0x448] sm:$0xff] }
  0x97   :  { %712 = vmatmul.f32.gmra.mxu0 %v2467_v10  ;;  %770 = vmatmul.f32.gmra.mxu2 %v2472_v11  ;;  %v257_v57 = vld [vmem:[%s4107_s1 + $0x668] sm:$0xff] }
  0x98   :  { %814 = vmatpush.msra.mxu0 %v81_v12  ;;  %842 = vmatpush.msra.mxu1 %v149_v13  ;;  %v57_v60 = vld [vmem:[%s4107_s1 + $0x28] sm:$0xff] }
  0x99   :  { %872 = vmatpush.msra.mxu2 %v209_v14  ;;  %900 = vmatpush.msra.mxu3 %v277_v15  ;;  %v125_v61 = vld [vmem:[%s4107_s1 + $0x248] sm:$0xff] }
  0x9a   :  { %741 = vmatmul.f32.gmra.mxu1 %v2491_v16  ;;  %799 = vmatmul.f32.gmra.mxu3 %v2496_v17  ;;  %v185_v0 = vld [vmem:[%s4107_s1 + $0x428] sm:$0xff] }
  0x9b   :  { %815 = vmatpush.msra.mxu0 %v77_v22  ;;  %843 = vmatpush.msra.mxu1 %v145_v23  ;;  %v253_v1 = vld [vmem:[%s4107_s1 + $0x648] sm:$0xff] }
  0x9c   :  { %873 = vmatpush.msra.mxu2 %v205_v26  ;;  %901 = vmatpush.msra.mxu3 %v273_v27  ;;  %v53_v6 = vld [vmem:[%s4107_s1 + $0x8] sm:$0xff] }
  0x9d   :  { %816 = vmatpush.msra.mxu0 %v73_v30  ;;  %844 = vmatpush.msra.mxu1 %v141_v31  ;;  %v121_v7 = vld [vmem:[%s4107_s1 + $0x228] sm:$0xff] }
  0x9e   :  { %874 = vmatpush.msra.mxu2 %v201_v32  ;;  %902 = vmatpush.msra.mxu3 %v269_v33  ;;  %v181_v8 = vld [vmem:[%s4107_s1 + $0x408] sm:$0xff] }
  0x9f   :  { %817 = vmatpush.msra.mxu0 %v69_v34  ;;  %845 = vmatpush.msra.mxu1 %v137_v35  ;;  %v249_v9 = vld [vmem:[%s4107_s1 + $0x628] sm:$0xff] }
  0xa0   :  { %875 = vmatpush.msra.mxu2 %v197_v36  ;;  %903 = vmatpush.msra.mxu3 %v265_v37  ;;  %v117_v12 = vld [vmem:[%s4107_s1 + $0x208] sm:$0xff] }
  0xa1   :  { %715 = vmatmul.f32.gmra.mxu0 %v2539_v40  ;;  %773 = vmatmul.f32.gmra.mxu2 %v2544_v41  ;;  %v245_v13 = vld [vmem:[%s4107_s1 + $0x608] sm:$0xff] }
  0xa2   :  { %818 = vmatpush.msra.mxu0 %v65_v42  ;;  %846 = vmatpush.msra.mxu1 %v133_v43  ;;  %v369_v14 = vld [vmem:[%s4107_s1 + $0x9e8] sm:$0xff] }
  0xa3   :  { %876 = vmatpush.msra.mxu2 %v193_v48  ;;  %904 = vmatpush.msra.mxu3 %v261_v49  ;;  %v497_v15 = vld [vmem:[%s4107_s1 + $0xde8] sm:$0xff] }
  0xa4   :  { %744 = vmatmul.f32.gmra.mxu1 %v2563_v50  ;;  %802 = vmatmul.f32.gmra.mxu3 %v2568_v51  ;;  %v365_v22 = vld [vmem:[%s4107_s1 + $0x9c8] sm:$0xff] }
  0xa5   :  { %819 = vmatpush.msra.mxu0 %v61_v54  ;;  %847 = vmatpush.msra.mxu1 %v129_v55  ;;  %v433_v23 = vld [vmem:[%s4107_s1 + $0xbe8] sm:$0xff] }
  0xa6   :  { %877 = vmatpush.msra.mxu2 %v189_v56  ;;  %905 = vmatpush.msra.mxu3 %v257_v57  ;;  %v493_v26 = vld [vmem:[%s4107_s1 + $0xdc8] sm:$0xff] }
  0xa7   :  { %820 = vmatpush.msra.mxu0 %v57_v60  ;;  %848 = vmatpush.msra.mxu1 %v125_v61  ;;  %v429_v27 = vld [vmem:[%s4107_s1 + $0xbc8] sm:$0xff] }
  0xa8   :  { %878 = vmatpush.msra.mxu2 %v185_v0  ;;  %906 = vmatpush.msra.mxu3 %v253_v1  ;;  %v489_v30 = vld [vmem:[%s4107_s1 + $0xda8] sm:$0xff] }
  0xa9   :  { %821 = vmatpush.msra.mxu0 %v53_v6  ;;  %849 = vmatpush.msra.mxu1 %v121_v7  ;;  %v425_v31 = vld [vmem:[%s4107_s1 + $0xba8] sm:$0xff] }
  0xaa   :  { %879 = vmatpush.msra.mxu2 %v181_v8  ;;  %907 = vmatpush.msra.mxu3 %v249_v9  ;;  %v485_v32 = vld [vmem:[%s4107_s1 + $0xd88] sm:$0xff] }
  0xab   :  { %822 = vmatmul.f32.vlgmr.msra.gmra.mxu0 %v2035_v62  ;;  %880 = vmatmul.f32.vlgmr.msra.gmra.mxu2 %v2040_v63  ;;  %v561_v62 = vld [vmem:[%s4107_s1 + $0xfe8] sm:$0xff] }
  0xac   :  { %850 = vmatpush.msra.mxu1 %v117_v12  ;;  %908 = vmatpush.msra.mxu3 %v245_v13  ;;  %v361_v63 = vld [vmem:[%s4107_s1 + $0x9a8] sm:$0xff] }
  0xad   :  { %922 = vmatpush.msrb.mxu0 %v369_v14  ;;  %980 = vmatpush.msrb.mxu2 %v497_v15  ;;  %v553_v33 = vld [vmem:[%s4107_s1 + $0xfa8] sm:$0xff] }
  0xae   :  { %851 = vmatmul.f32.vlgmr.msra.gmra.mxu1 %v2059_v4  ;;  %909 = vmatmul.f32.vlgmr.msra.gmra.mxu3 %v2064_v5  ;;  %v557_v4 = vld [vmem:[%s4107_s1 + $0xfc8] sm:$0xff] }
  0xaf   :  { %923 = vmatpush.msrb.mxu0 %v365_v22  ;;  %951 = vmatpush.msrb.mxu1 %v433_v23  ;;  %v357_v5 = vld [vmem:[%s4107_s1 + $0x988] sm:$0xff] }
  0xb0   :  { %981 = vmatpush.msrb.mxu2 %v493_v26  ;;  %1009 = vmatpush.msrb.mxu3 %v561_v62  ;;  %v353_v34 = vld [vmem:[%s4107_s1 + $0x968] sm:$0xff] }
  0xb1   :  { %924 = vmatpush.msrb.mxu0 %v361_v63  ;;  %952 = vmatpush.msrb.mxu1 %v429_v27  ;;  %v421_v35 = vld [vmem:[%s4107_s1 + $0xb88] sm:$0xff] }
  0xb2   :  { %982 = vmatpush.msrb.mxu2 %v489_v30  ;;  %1010 = vmatpush.msrb.mxu3 %v557_v4  ;;  %v481_v36 = vld [vmem:[%s4107_s1 + $0xd68] sm:$0xff] }
  0xb3   :  { %925 = vmatpush.msrb.mxu0 %v357_v5  ;;  %953 = vmatpush.msrb.mxu1 %v425_v31  ;;  %v549_v37 = vld [vmem:[%s4107_s1 + $0xf88] sm:$0xff] }
  0xb4   :  { %983 = vmatpush.msrb.mxu2 %v485_v32  ;;  %1011 = vmatpush.msrb.mxu3 %v553_v33  ;;  %v349_v42 = vld [vmem:[%s4107_s1 + $0x948] sm:$0xff] }
  0xb5   :  { %825 = vmatmul.f32.gmra.mxu0 %v2107_v18  ;;  %883 = vmatmul.f32.gmra.mxu2 %v2112_v19  ;;  %v417_v43 = vld [vmem:[%s4107_s1 + $0xb68] sm:$0xff] }
  0xb6   :  { %926 = vmatpush.msrb.mxu0 %v353_v34  ;;  %954 = vmatpush.msrb.mxu1 %v421_v35  ;;  %v477_v48 = vld [vmem:[%s4107_s1 + $0xd48] sm:$0xff] }
  0xb7   :  { %984 = vmatpush.msrb.mxu2 %v481_v36  ;;  %1012 = vmatpush.msrb.mxu3 %v549_v37  ;;  %v545_v18 = vld [vmem:[%s4107_s1 + $0xf68] sm:$0xff]  ;;  %v114_v36 = vld [vmem:[%s4107_s1 + $0x1f0] sm:$0xff] }
  0xb8   :  { %854 = vmatmul.f32.gmra.mxu1 %v2131_v24  ;;  %912 = vmatmul.f32.gmra.mxu3 %v2136_v25  ;;  %v345_v19 = vld [vmem:[%s4107_s1 + $0x928] sm:$0xff]  ;;  %v242_v37 = vld [vmem:[%s4107_s1 + $0x5f0] sm:$0xff] }
  0xb9   :  { %v413_v49 = vld [vmem:[%s4107_s1 + $0xb48] sm:$0xff]  ;;  %927 = vmatpush.msrb.mxu0 %v349_v42  ;;  %955 = vmatpush.msrb.mxu1 %v417_v43  ;;  %v110_v42 = vld [vmem:[%s4107_s1 + $0x1d0] sm:$0xff] }
  0xba   :  { %v473_v54 = vld [vmem:[%s4107_s1 + $0xd28] sm:$0xff]  ;;  %985 = vmatpush.msrb.mxu2 %v477_v48  ;;  %1013 = vmatpush.msrb.mxu3 %v545_v18  ;;  %v178_v43 = vld [vmem:[%s4107_s1 + $0x3f0] sm:$0xff] }
  0xbb   :  { %v541_v24 = vld [vmem:[%s4107_s1 + $0xf48] sm:$0xff]  ;;  %928 = vmatpush.msrb.mxu0 %v345_v19  ;;  %956 = vmatpush.msrb.mxu1 %v413_v49  ;;  %v238_v48 = vld [vmem:[%s4107_s1 + $0x5d0] sm:$0xff] }
  0xbc   :  { %v341_v25 = vld [vmem:[%s4107_s1 + $0x908] sm:$0xff]  ;;  %986 = vmatpush.msrb.mxu2 %v473_v54  ;;  %1014 = vmatpush.msrb.mxu3 %v541_v24  ;;  %v174_v18 = vld [vmem:[%s4107_s1 + $0x3d0] sm:$0xff] }
  0xbd   :  { %v409_v55 = vld [vmem:[%s4107_s1 + $0xb28] sm:$0xff]  ;;  %929 = vmatpush.msrb.mxu0 %v341_v25  ;;  %886 = vmatmul.f32.gmra.mxu2 %v2184_v39  ;;  %v234_v19 = vld [vmem:[%s4107_s1 + $0x5b0] sm:$0xff]  ;;  %v2862_v54 = vpop.f32.mrf.mxu0 }
  0xbe   :  { %v469_v56 = vld [vmem:[%s4107_s1 + $0xd08] sm:$0xff]  ;;  %957 = vmatpush.msrb.mxu1 %v409_v55  ;;  %828 = vmatmul.f32.gmra.mxu0 %v2179_v38  ;;  %v170_v49 = vld [vmem:[%s4107_s1 + $0x3b0] sm:$0xff] }
  0xbf   :  { %v537_v57 = vld [vmem:[%s4107_s1 + $0xf28] sm:$0xff]  ;;  %987 = vmatpush.msrb.mxu2 %v469_v56  ;;  %v230_v24 = vld [vmem:[%s4107_s1 + $0x590] sm:$0xff] }
  0xc0   :  { %v337_v60 = vld [vmem:[%s4107_s1 + $0x8e8] sm:$0xff]  ;;  %1015 = vmatpush.msrb.mxu3 %v537_v57  ;;  %857 = vmatmul.f32.gmra.mxu1 %v2203_v44  ;;  %v298_v25 = vld [vmem:[%s4107_s1 + $0x7b0] sm:$0xff]  ;;  %v2876_v57 = vpop.f32.mrf.mxu1 }
  0xc1   :  { %v405_v61 = vld [vmem:[%s4107_s1 + $0xb08] sm:$0xff]  ;;  %930 = vmatpush.msrb.mxu0 %v337_v60  ;;  %915 = vmatmul.f32.gmra.mxu3 %v2208_v45  ;;  %v98_v55 = vld [vmem:[%s4107_s1 + $0x170] sm:$0xff] }
  0xc2   :  { %v465_v0 = vld [vmem:[%s4107_s1 + $0xce8] sm:$0xff]  ;;  %958 = vmatpush.msrb.mxu1 %v405_v61  ;;  %v166_v56 = vld [vmem:[%s4107_s1 + $0x390] sm:$0xff] }
  0xc3   :  { %v533_v1 = vld [vmem:[%s4107_s1 + $0xf08] sm:$0xff]  ;;  %988 = vmatpush.msrb.mxu2 %v465_v0  ;;  %v226_v60 = vld [vmem:[%s4107_s1 + $0x570] sm:$0xff] }
  0xc4   :  { %v333_v6 = vld [vmem:[%s4107_s1 + $0x8c8] sm:$0xff]  ;;  %1016 = vmatpush.msrb.mxu3 %v533_v1  ;;  %v294_v61 = vld [vmem:[%s4107_s1 + $0x790] sm:$0xff] }
  0xc5   :  { %v401_v7 = vld [vmem:[%s4107_s1 + $0xae8] sm:$0xff]  ;;  %931 = vmatpush.msrb.mxu0 %v333_v6  ;;  %889 = vmatmul.f32.gmra.mxu2 %v2256_v59  ;;  %v94_v0 = vld [vmem:[%s4107_s1 + $0x150] sm:$0xff]  ;;  %v2892_v6 = vpop.f32.mrf.mxu2 }
  0xc6   :  { %v461_v8 = vld [vmem:[%s4107_s1 + $0xcc8] sm:$0xff]  ;;  %959 = vmatpush.msrb.mxu1 %v401_v7  ;;  %831 = vmatmul.f32.gmra.mxu0 %v2251_v58  ;;  %v162_v1 = vld [vmem:[%s4107_s1 + $0x370] sm:$0xff] }
  0xc7   :  { %v529_v38 = vld [vmem:[%s4107_s1 + $0xee8] sm:$0xff]  ;;  %989 = vmatpush.msrb.mxu2 %v461_v8  ;;  %v90_v7 = vld [vmem:[%s4107_s1 + $0x130] sm:$0xff] }
  0xc8   :  { %v329_v39 = vld [vmem:[%s4107_s1 + $0x8a8] sm:$0xff]  ;;  %1017 = vmatpush.msrb.mxu3 %v529_v38  ;;  %860 = vmatmul.f32.gmra.mxu1 %v2275_v2  ;;  %v158_v8 = vld [vmem:[%s4107_s1 + $0x350] sm:$0xff] }
  0xc9   :  { %v397_v9 = vld [vmem:[%s4107_s1 + $0xac8] sm:$0xff]  ;;  %932 = vmatpush.msrb.mxu0 %v329_v39  ;;  %918 = vmatmul.f32.gmra.mxu3 %v2280_v3  ;;  %v218_v38 = vld [vmem:[%s4107_s1 + $0x530] sm:$0xff]  ;;  %v2914_v39 = vpop.f32.mrf.mxu3 }
  0xca   :  { %v457_v12 = vld [vmem:[%s4107_s1 + $0xca8] sm:$0xff]  ;;  %960 = vmatpush.msrb.mxu1 %v397_v9  ;;  %4113 = vst [vmem:[#allocation2_spill] sm:$0xff] %v2914_v39  ;;  %v154_v9 = vld [vmem:[%s4107_s1 + $0x330] sm:$0xff]  ;;  %v255_v39 = vld [vmem:[%s4107_s1 + $0x658] sm:$0xff] }
  0xcb   :  { %v525_v44 = vld [vmem:[%s4107_s1 + $0xec8] sm:$0xff]  ;;  %990 = vmatpush.msrb.mxu2 %v457_v12 }
  0xcc   :  { %v325_v45 = vld [vmem:[%s4107_s1 + $0x888] sm:$0xff]  ;;  %1018 = vmatpush.msrb.mxu3 %v525_v44  ;;  %v214_v44 = vld [vmem:[%s4107_s1 + $0x510] sm:$0xff] }
  0xcd   :  { %v393_v13 = vld [vmem:[%s4107_s1 + $0xaa8] sm:$0xff]  ;;  %933 = vmatpush.msrb.mxu0 %v325_v45  ;;  %v282_v45 = vld [vmem:[%s4107_s1 + $0x730] sm:$0xff] }
  0xce   :  { %v453_v14 = vld [vmem:[%s4107_s1 + $0xc88] sm:$0xff]  ;;  %961 = vmatpush.msrb.mxu1 %v393_v13  ;;  %v2922_v12 = vpop.f32.mrf.mxu0  ;;  %v82_v13 = vld [vmem:[%s4107_s1 + $0xf0] sm:$0xff] }
  0xcf   :  { %v521_v15 = vld [vmem:[%s4107_s1 + $0xea8] sm:$0xff]  ;;  %991 = vmatpush.msrb.mxu2 %v453_v14  ;;  %v150_v14 = vld [vmem:[%s4107_s1 + $0x310] sm:$0xff] }
  0xd0   :  { %v321_v22 = vld [vmem:[%s4107_s1 + $0x868] sm:$0xff]  ;;  %1019 = vmatpush.msrb.mxu3 %v521_v15  ;;  %v2936_v15 = vpop.f32.mrf.mxu1 }
  0xd1   :  { %v389_v23 = vld [vmem:[%s4107_s1 + $0xa88] sm:$0xff]  ;;  %934 = vmatpush.msrb.mxu0 %v321_v22  ;;  %v210_v22 = vld [vmem:[%s4107_s1 + $0x4f0] sm:$0xff] }
  0xd2   :  { %v449_v26 = vld [vmem:[%s4107_s1 + $0xc68] sm:$0xff]  ;;  %962 = vmatpush.msrb.mxu1 %v389_v23  ;;  %v278_v23 = vld [vmem:[%s4107_s1 + $0x710] sm:$0xff] }
  0xd3   :  { %v517_v62 = vld [vmem:[%s4107_s1 + $0xe88] sm:$0xff]  ;;  %992 = vmatpush.msrb.mxu2 %v449_v26  ;;  %v78_v26 = vld [vmem:[%s4107_s1 + $0xd0] sm:$0xff] }
  0xd4   :  { %v317_v63 = vld [vmem:[%s4107_s1 + $0x848] sm:$0xff]  ;;  %1020 = vmatpush.msrb.mxu3 %v517_v62  ;;  %v146_v62 = vld [vmem:[%s4107_s1 + $0x2f0] sm:$0xff] }
  0xd5   :  { %v385_v27 = vld [vmem:[%s4107_s1 + $0xa68] sm:$0xff]  ;;  %935 = vmatpush.msrb.mxu0 %v317_v63  ;;  %v2952_v63 = vpop.f32.mrf.mxu2 }
  0xd6   :  { %v445_v30 = vld [vmem:[%s4107_s1 + $0xc48] sm:$0xff]  ;;  %963 = vmatpush.msrb.mxu1 %v385_v27  ;;  %v74_v27 = vld [vmem:[%s4107_s1 + $0xb0] sm:$0xff] }
  0xd7   :  { %v513_v58 = vld [vmem:[%s4107_s1 + $0xe68] sm:$0xff]  ;;  %993 = vmatpush.msrb.mxu2 %v445_v30  ;;  %v142_v30 = vld [vmem:[%s4107_s1 + $0x2d0] sm:$0xff] }
  0xd8   :  { %v313_v59 = vld [vmem:[%s4107_s1 + $0x828] sm:$0xff]  ;;  %1021 = vmatpush.msrb.mxu3 %v513_v58  ;;  %v202_v58 = vld [vmem:[%s4107_s1 + $0x4b0] sm:$0xff] }
  0xd9   :  { %v381_v4 = vld [vmem:[%s4107_s1 + $0xa48] sm:$0xff]  ;;  %936 = vmatpush.msrb.mxu0 %v313_v59  ;;  %v2974_v59 = vpop.f32.mrf.mxu3 }
  0xda   :  { %v441_v5 = vld [vmem:[%s4107_s1 + $0xc28] sm:$0xff]  ;;  %964 = vmatpush.msrb.mxu1 %v381_v4  ;;  %4114 = vst [vmem:[#allocation3_spill] sm:$0xff] %v2974_v59  ;;  %v138_v4 = vld [vmem:[%s4107_s1 + $0x2b0] sm:$0xff]  ;;  %v55_v59 = vld [vmem:[%s4107_s1 + $0x18] sm:$0xff] }
  0xdb   :  { %v509_v2 = vld [vmem:[%s4107_s1 + $0xe48] sm:$0xff]  ;;  %994 = vmatpush.msrb.mxu2 %v441_v5 }
  0xdc   :  { %v309_v3 = vld [vmem:[%s4107_s1 + $0x808] sm:$0xff]  ;;  %1022 = vmatpush.msrb.mxu3 %v509_v2  ;;  %v198_v2 = vld [vmem:[%s4107_s1 + $0x490] sm:$0xff] }
  0xdd   :  { %v377_v31 = vld [vmem:[%s4107_s1 + $0xa28] sm:$0xff]  ;;  %937 = vmatpush.msrb.mxu0 %v309_v3  ;;  %v266_v3 = vld [vmem:[%s4107_s1 + $0x6b0] sm:$0xff] }
  0xde   :  { %v437_v32 = vld [vmem:[%s4107_s1 + $0xc08] sm:$0xff]  ;;  %965 = vmatpush.msrb.mxu1 %v377_v31  ;;  %938 = vmatmul.f32.vlgmr.msrb.gmra.mxu0 %v2323_v20  ;;  %v306_v20 = vld [vmem:[%s4107_s1 + $0x7f0] sm:$0xff] }
  0xdf   :  { %v505_v33 = vld [vmem:[%s4107_s1 + $0xe28] sm:$0xff]  ;;  %995 = vmatpush.msrb.mxu2 %v437_v32  ;;  %1038 = vmatpush.msra.mxu0 %v114_v36  ;;  %v2982_v5 = vpop.f32.mrf.mxu0  ;;  %v66_v31 = vld [vmem:[%s4107_s1 + $0x70] sm:$0xff] }
  0xe0   :  { %v373_v34 = vld [vmem:[%s4107_s1 + $0xa08] sm:$0xff]  ;;  %1023 = vmatpush.msrb.mxu3 %v505_v33  ;;  %996 = vmatmul.f32.vlgmr.msrb.gmra.mxu2 %v2328_v21  ;;  %v106_v21 = vld [vmem:[%s4107_s1 + $0x1b0] sm:$0xff]  ;;  %v2996_v33 = vpop.f32.mrf.mxu1 }
  0xe1   :  { %v501_v35 = vld [vmem:[%s4107_s1 + $0xe08] sm:$0xff]  ;;  %966 = vmatpush.msrb.mxu1 %v373_v34  ;;  %1096 = vmatpush.msra.mxu2 %v242_v37  ;;  %v134_v32 = vld [vmem:[%s4107_s1 + $0x290] sm:$0xff] }
  0xe2   :  { %1024 = vmatpush.msrb.mxu3 %v501_v35  ;;  %967 = vmatmul.f32.vlgmr.msrb.gmra.mxu1 %v2347_v28  ;;  %v302_v28 = vld [vmem:[%s4107_s1 + $0x7d0] sm:$0xff] }
  0xe3   :  { %1025 = vmatmul.f32.vlgmr.msrb.gmra.mxu3 %v2352_v29  ;;  %1039 = vmatpush.msra.mxu0 %v110_v42  ;;  %v102_v29 = vld [vmem:[%s4107_s1 + $0x190] sm:$0xff]  ;;  %v3012_v42 = vpop.f32.mrf.mxu2 }
  0xe4   :  { %1067 = vmatpush.msra.mxu1 %v178_v43  ;;  %1097 = vmatpush.msra.mxu2 %v238_v48  ;;  %v194_v34 = vld [vmem:[%s4107_s1 + $0x470] sm:$0xff] }
  0xe5   :  { %1125 = vmatpush.msra.mxu3 %v306_v20  ;;  %1040 = vmatpush.msra.mxu0 %v106_v21  ;;  %v262_v35 = vld [vmem:[%s4107_s1 + $0x690] sm:$0xff]  ;;  %v3034_v21 = vpop.f32.mrf.mxu3 }
  0xe6   :  { %1068 = vmatpush.msra.mxu1 %v174_v18  ;;  %1098 = vmatpush.msra.mxu2 %v234_v19  ;;  %v62_v36 = vld [vmem:[%s4107_s1 + $0x50] sm:$0xff] }
  0xe7   :  { %1126 = vmatpush.msra.mxu3 %v302_v28  ;;  %1041 = vmatpush.msra.mxu0 %v102_v29  ;;  %v130_v37 = vld [vmem:[%s4107_s1 + $0x270] sm:$0xff] }
  0xe8   :  { %1069 = vmatpush.msra.mxu1 %v170_v49  ;;  %1099 = vmatpush.msra.mxu2 %v230_v24  ;;  %v58_v43 = vld [vmem:[%s4107_s1 + $0x30] sm:$0xff] }
  0xe9   :  { %1127 = vmatpush.msra.mxu3 %v298_v25  ;;  %941 = vmatmul.f32.gmra.mxu0 %v2395_v46  ;;  %v222_v46 = vld [vmem:[%s4107_s1 + $0x550] sm:$0xff]  ;;  %v3056_v25 = vpop.f32.mrf.mxu1 }
  0xea   :  { %999 = vmatmul.f32.gmra.mxu2 %v2400_v47  ;;  %1042 = vmatpush.msra.mxu0 %v98_v55  ;;  %v290_v47 = vld [vmem:[%s4107_s1 + $0x770] sm:$0xff] }
  0xeb   :  { %1070 = vmatpush.msra.mxu1 %v166_v56  ;;  %1100 = vmatpush.msra.mxu2 %v226_v60  ;;  %v126_v48 = vld [vmem:[%s4107_s1 + $0x250] sm:$0xff]  ;;  %v3067_v60 = vld [vmem:[%s4108_s0] sm:$0xff] }
  0xec   :  { %1128 = vmatpush.msra.mxu3 %v294_v61  ;;  %970 = vmatmul.f32.gmra.mxu1 %v2419_v52  ;;  %v286_v52 = vld [vmem:[%s4107_s1 + $0x750] sm:$0xff] }
  0xed   :  { %1028 = vmatmul.f32.gmra.mxu3 %v2424_v53  ;;  %1043 = vmatpush.msra.mxu0 %v94_v0  ;;  %v86_v53 = vld [vmem:[%s4107_s1 + $0x110] sm:$0xff] }
  0xee   :  { %1071 = vmatpush.msra.mxu1 %v162_v1  ;;  %1101 = vmatpush.msra.mxu2 %v222_v46  ;;  %v186_v20 = vld [vmem:[%s4107_s1 + $0x430] sm:$0xff]  ;;  %v3082_v46 = vpop.f32.mrf.mxu2 }
  0xef   :  { %1129 = vmatpush.msra.mxu3 %v290_v47  ;;  %1044 = vmatpush.msra.mxu0 %v90_v7  ;;  %v122_v18 = vld [vmem:[%s4107_s1 + $0x230] sm:$0xff] }
  0xf0   :  { %1072 = vmatpush.msra.mxu1 %v158_v8  ;;  %1102 = vmatpush.msra.mxu2 %v218_v38  ;;  %v3042_v19 = vpop.f32.mrf.mxu0  ;;  %v182_v28 = vld [vmem:[%s4107_s1 + $0x410] sm:$0xff]  ;;  %v3093_v8 = vld [vmem:[%s4108_s0 + $0x8] sm:$0xff]  ;;  %v3099_v38 = vld [vmem:[%s4108_s0 + $0x18] sm:$0xff] }
  0xf1   :  { %1130 = vmatpush.msra.mxu3 %v286_v52  ;;  %1045 = vmatpush.msra.mxu0 %v86_v53  ;;  %v250_v29 = vld [vmem:[%s4107_s1 + $0x630] sm:$0xff] }
  0xf2   :  { %1073 = vmatpush.msra.mxu1 %v154_v9  ;;  %1103 = vmatpush.msra.mxu2 %v214_v44  ;;  %v118_v49 = vld [vmem:[%s4107_s1 + $0x210] sm:$0xff] }
  0xf3   :  { %1131 = vmatpush.msra.mxu3 %v282_v45  ;;  %944 = vmatmul.f32.gmra.mxu0 %v2467_v10  ;;  %v206_v10 = vld [vmem:[%s4107_s1 + $0x4d0] sm:$0xff]  ;;  %v3114_v45 = vpop.f32.mrf.mxu3 }
  0xf4   :  { %1002 = vmatmul.f32.gmra.mxu2 %v2472_v11  ;;  %1046 = vmatpush.msra.mxu0 %v82_v13  ;;  %v274_v11 = vld [vmem:[%s4107_s1 + $0x6f0] sm:$0xff] }
  0xf5   :  { %1074 = vmatpush.msra.mxu1 %v150_v14  ;;  %1104 = vmatpush.msra.mxu2 %v210_v22  ;;  %v246_v24 = vld [vmem:[%s4107_s1 + $0x610] sm:$0xff] }
  0xf6   :  { %1132 = vmatpush.msra.mxu3 %v278_v23  ;;  %973 = vmatmul.f32.gmra.mxu1 %v2491_v16  ;;  %v270_v16 = vld [vmem:[%s4107_s1 + $0x6d0] sm:$0xff] }
  0xf7   :  { %1031 = vmatmul.f32.gmra.mxu3 %v2496_v17  ;;  %1047 = vmatpush.msra.mxu0 %v78_v26  ;;  %v70_v17 = vld [vmem:[%s4107_s1 + $0x90] sm:$0xff] }
  0xf8   :  { %1075 = vmatpush.msra.mxu1 %v146_v62  ;;  %1105 = vmatpush.msra.mxu2 %v206_v10  ;;  %v370_v55 = vld [vmem:[%s4107_s1 + $0x9f0] sm:$0xff] }
  0xf9   :  { %1133 = vmatpush.msra.mxu3 %v274_v11  ;;  %1048 = vmatpush.msra.mxu0 %v74_v27  ;;  %v498_v56 = vld [vmem:[%s4107_s1 + $0xdf0] sm:$0xff] }
  0xfa   :  { %1076 = vmatpush.msra.mxu1 %v142_v30  ;;  %1106 = vmatpush.msra.mxu2 %v202_v58  ;;  %v3073_v61 = vld [vmem:[%s4108_s0 + $0x10] sm:$0xff]  ;;  %v3147_v58 = vld [vmem:[%s4108_s0 + $0x40] sm:$0xff] }
  0xfb   :  { %1134 = vmatpush.msra.mxu3 %v270_v16  ;;  %1049 = vmatpush.msra.mxu0 %v70_v17  ;;  %v366_v0 = vld [vmem:[%s4107_s1 + $0x9d0] sm:$0xff] }
  0xfc   :  { %1077 = vmatpush.msra.mxu1 %v138_v4  ;;  %1107 = vmatpush.msra.mxu2 %v198_v2  ;;  %v434_v1 = vld [vmem:[%s4107_s1 + $0xbf0] sm:$0xff] }
  0xfd   :  { %1135 = vmatpush.msra.mxu3 %v266_v3  ;;  %947 = vmatmul.f32.gmra.mxu0 %v2539_v40  ;;  %v190_v40 = vld [vmem:[%s4107_s1 + $0x450] sm:$0xff] }
  0xfe   :  { %1005 = vmatmul.f32.gmra.mxu2 %v2544_v41  ;;  %1050 = vmatpush.msra.mxu0 %v66_v31  ;;  %v258_v41 = vld [vmem:[%s4107_s1 + $0x670] sm:$0xff] }
  0xff   :  { %1078 = vmatpush.msra.mxu1 %v134_v32  ;;  %1108 = vmatpush.msra.mxu2 %v194_v34  ;;  %v494_v47 = vld [vmem:[%s4107_s1 + $0xdd0] sm:$0xff]  ;;  %v3173_v32 = vld [vmem:[%s4108_s0 + $0x48] sm:$0xff]  ;;  %v3179_v34 = vld [vmem:[%s4108_s0 + $0x58] sm:$0xff] }
 0x100   :  { %1136 = vmatpush.msra.mxu3 %v262_v35  ;;  %976 = vmatmul.f32.gmra.mxu1 %v2563_v50  ;;  %v254_v50 = vld [vmem:[%s4107_s1 + $0x650] sm:$0xff] }
 0x101   :  { %1034 = vmatmul.f32.gmra.mxu3 %v2568_v51  ;;  %1051 = vmatpush.msra.mxu0 %v62_v36  ;;  %v54_v51 = vld [vmem:[%s4107_s1 + $0x10] sm:$0xff]  ;;  %v3122_v22 = vpop.f32.mrf.mxu0 }
 0x102   :  { %1079 = vmatpush.msra.mxu1 %v130_v37  ;;  %1109 = vmatpush.msra.mxu2 %v190_v40  ;;  %v562_v7 = vld [vmem:[%s4107_s1 + $0xff0] sm:$0xff]  ;;  %4115 = vst [vmem:[#allocation4_spill] sm:$0xff] %v3122_v22  ;;  %v71_v22 = vld [vmem:[%s4107_s1 + $0x98] sm:$0xff] }
 0x103   :  { %1137 = vmatpush.msra.mxu3 %v258_v41  ;;  %1052 = vmatpush.msra.mxu0 %v58_v43  ;;  %v362_v52 = vld [vmem:[%s4107_s1 + $0x9b0] sm:$0xff]  ;;  %v3136_v11 = vpop.f32.mrf.mxu1 }
 0x104   :  { %1080 = vmatpush.msra.mxu1 %v126_v48  ;;  %1110 = vmatpush.msra.mxu2 %v186_v20  ;;  %v430_v53 = vld [vmem:[%s4107_s1 + $0xbd0] sm:$0xff]  ;;  %4116 = vst [vmem:[#allocation5_spill] sm:$0xff] %v3136_v11 }
 0x105   :  { %1138 = vmatpush.msra.mxu3 %v254_v50  ;;  %1053 = vmatpush.msra.mxu0 %v54_v51  ;;  %v490_v9 = vld [vmem:[%s4107_s1 + $0xdb0] sm:$0xff] }
 0x106   :  { %1081 = vmatpush.msra.mxu1 %v122_v18  ;;  %1111 = vmatpush.msra.mxu2 %v182_v28  ;;  %v558_v44 = vld [vmem:[%s4107_s1 + $0xfd0] sm:$0xff]  ;;  %v3162_v2 = vpop.f32.mrf.mxu2 }
 0x107   :  { %1139 = vmatpush.msra.mxu3 %v250_v29  ;;  %1054 = vmatmul.f32.vlgmr.msra.gmra.mxu0 %v3067_v60  ;;  %v358_v13 = vld [vmem:[%s4107_s1 + $0x990] sm:$0xff]  ;;  %4117 = vst [vmem:[#allocation6_spill] sm:$0xff] %v3162_v2  ;;  %v287_v2 = vld [vmem:[%s4107_s1 + $0x758] sm:$0xff] }
 0x108   :  { %1112 = vmatmul.f32.vlgmr.msra.gmra.mxu2 %v3073_v61  ;;  %1082 = vmatpush.msra.mxu1 %v118_v49  ;;  %v426_v14 = vld [vmem:[%s4107_s1 + $0xbb0] sm:$0xff] }
 0x109   :  { %1140 = vmatpush.msra.mxu3 %v246_v24  ;;  %1154 = vmatpush.msrb.mxu0 %v370_v55  ;;  %v486_v23 = vld [vmem:[%s4107_s1 + $0xd90] sm:$0xff]  ;;  %v3227_v55 = vld [vmem:[%s4108_s0 + $0x80] sm:$0xff] }
 0x10a   :  { %1212 = vmatpush.msrb.mxu2 %v498_v56  ;;  %1083 = vmatmul.f32.vlgmr.msra.gmra.mxu1 %v3093_v8  ;;  %v554_v26 = vld [vmem:[%s4107_s1 + $0xfb0] sm:$0xff]  ;;  %v3194_v41 = vpop.f32.mrf.mxu3  ;;  %v3202_v20 = vpop.f32.mrf.mxu0 }
 0x10b   :  { %1141 = vmatmul.f32.vlgmr.msra.gmra.mxu3 %v3099_v38  ;;  %1155 = vmatpush.msrb.mxu0 %v366_v0  ;;  %v354_v62 = vld [vmem:[%s4107_s1 + $0x970] sm:$0xff]  ;;  %4118 = vst [vmem:[#allocation7_spill] sm:$0xff] %v3194_v41  ;;  %v99_v41 = vld [vmem:[%s4107_s1 + $0x178] sm:$0xff] }
 0x10c   :  { %1183 = vmatpush.msrb.mxu1 %v434_v1  ;;  %1213 = vmatpush.msrb.mxu2 %v494_v47  ;;  %v422_v10 = vld [vmem:[%s4107_s1 + $0xb90] sm:$0xff]  ;;  %4119 = vst [vmem:[#allocation8_spill] sm:$0xff] %v3202_v20  ;;  %v199_v20 = vld [vmem:[%s4107_s1 + $0x498] sm:$0xff] }
 0x10d   :  { %1241 = vmatpush.msrb.mxu3 %v562_v7  ;;  %1156 = vmatpush.msrb.mxu0 %v362_v52  ;;  %v482_v27 = vld [vmem:[%s4107_s1 + $0xd70] sm:$0xff]  ;;  %v3216_v29 = vpop.f32.mrf.mxu1 }
 0x10e   :  { %1184 = vmatpush.msrb.mxu1 %v430_v53  ;;  %1214 = vmatpush.msrb.mxu2 %v490_v9  ;;  %v550_v30 = vld [vmem:[%s4107_s1 + $0xf90] sm:$0xff]  ;;  %4120 = vst [vmem:[#allocation9_spill] sm:$0xff] %v3216_v29  ;;  %v3253_v53 = vld [vmem:[%s4108_s0 + $0x88] sm:$0xff]  ;;  %v3259_v9 = vld [vmem:[%s4108_s0 + $0x98] sm:$0xff] }
 0x10f   :  { %1242 = vmatpush.msrb.mxu3 %v558_v44  ;;  %1157 = vmatpush.msrb.mxu0 %v358_v13  ;;  %v3153_v16 = vld [vmem:[%s4108_s0 + $0x50] sm:$0xff]  ;;  %v215_v29 = vld [vmem:[%s4107_s1 + $0x518] sm:$0xff] }
 0x110   :  { %1185 = vmatpush.msrb.mxu1 %v426_v14  ;;  %1215 = vmatpush.msrb.mxu2 %v486_v23  ;;  %v350_v17 = vld [vmem:[%s4107_s1 + $0x950] sm:$0xff]  ;;  %v3242_v47 = vpop.f32.mrf.mxu2 }
 0x111   :  { %1243 = vmatpush.msrb.mxu3 %v554_v26  ;;  %1057 = vmatmul.f32.gmra.mxu0 %v3147_v58  ;;  %v418_v4 = vld [vmem:[%s4107_s1 + $0xb70] sm:$0xff]  ;;  %4121 = vst [vmem:[#allocation10_spill] sm:$0xff] %v3242_v47  ;;  %v87_v47 = vld [vmem:[%s4107_s1 + $0x118] sm:$0xff] }
 0x112   :  { %1115 = vmatmul.f32.gmra.mxu2 %v3153_v16  ;;  %1158 = vmatpush.msrb.mxu0 %v354_v62  ;;  %v478_v3 = vld [vmem:[%s4107_s1 + $0xd50] sm:$0xff] }
 0x113   :  { %1186 = vmatpush.msrb.mxu1 %v422_v10  ;;  %1216 = vmatpush.msrb.mxu2 %v482_v27  ;;  %v546_v31 = vld [vmem:[%s4107_s1 + $0xf70] sm:$0xff]  ;;  %v3274_v26 = vpop.f32.mrf.mxu3 }
 0x114   :  { %1244 = vmatpush.msrb.mxu3 %v550_v30  ;;  %1086 = vmatmul.f32.gmra.mxu1 %v3173_v32  ;;  %v346_v35 = vld [vmem:[%s4107_s1 + $0x930] sm:$0xff]  ;;  %4122 = vst [vmem:[#allocation11_spill] sm:$0xff] %v3274_v26  ;;  %v3282_v27 = vpop.f32.mrf.mxu0  ;;  %v227_v26 = vld [vmem:[%s4107_s1 + $0x578] sm:$0xff] }
 0x115   :  { %1144 = vmatmul.f32.gmra.mxu3 %v3179_v34  ;;  %v414_v36 = vld [vmem:[%s4107_s1 + $0xb50] sm:$0xff]  ;;  %1159 = vmatpush.msrb.mxu0 %v350_v17  ;;  %4123 = vst [vmem:[#allocation12_spill] sm:$0xff] %v3282_v27  ;;  %v183_v27 = vld [vmem:[%s4107_s1 + $0x418] sm:$0xff] }
 0x116   :  { %1187 = vmatpush.msrb.mxu1 %v418_v4  ;;  %v474_v37 = vld [vmem:[%s4107_s1 + $0xd30] sm:$0xff]  ;;  %1217 = vmatpush.msrb.mxu2 %v478_v3 }
 0x117   :  { %v542_v40 = vld [vmem:[%s4107_s1 + $0xf50] sm:$0xff]  ;;  %1245 = vmatpush.msrb.mxu3 %v546_v31  ;;  %1160 = vmatpush.msrb.mxu0 %v346_v35  ;;  %v3296_v31 = vpop.f32.mrf.mxu1 }
 0x118   :  { %v342_v43 = vld [vmem:[%s4107_s1 + $0x910] sm:$0xff]  ;;  %1188 = vmatpush.msrb.mxu1 %v414_v36  ;;  %1218 = vmatpush.msrb.mxu2 %v474_v37  ;;  %4124 = vst [vmem:[#allocation13_spill] sm:$0xff] %v3296_v31  ;;  %v3307_v37 = vld [vmem:[%s4108_s0 + $0xc0] sm:$0xff] }
 0x119   :  { %v410_v48 = vld [vmem:[%s4107_s1 + $0xb30] sm:$0xff]  ;;  %1246 = vmatpush.msrb.mxu3 %v542_v40  ;;  %1161 = vmatpush.msrb.mxu0 %v342_v43 }
 0x11a   :  { %v470_v50 = vld [vmem:[%s4107_s1 + $0xd10] sm:$0xff]  ;;  %1189 = vmatpush.msrb.mxu1 %v410_v48  ;;  %1060 = vmatmul.f32.gmra.mxu0 %v3227_v55 }
 0x11b   :  { %v538_v51 = vld [vmem:[%s4107_s1 + $0xf30] sm:$0xff]  ;;  %1219 = vmatpush.msrb.mxu2 %v470_v50  ;;  %v3322_v50 = vpop.f32.mrf.mxu2 }
 0x11c   :  { %v338_v18 = vld [vmem:[%s4107_s1 + $0x8f0] sm:$0xff]  ;;  %1247 = vmatpush.msrb.mxu3 %v538_v51  ;;  %1089 = vmatmul.f32.gmra.mxu1 %v3253_v53  ;;  %4125 = vst [vmem:[#allocation14_spill] sm:$0xff] %v3322_v50 }
 0x11d   :  { %v406_v28 = vld [vmem:[%s4107_s1 + $0xb10] sm:$0xff]  ;;  %1162 = vmatpush.msrb.mxu0 %v338_v18  ;;  %1147 = vmatmul.f32.gmra.mxu3 %v3259_v9 }
 0x11e   :  { %v466_v49 = vld [vmem:[%s4107_s1 + $0xcf0] sm:$0xff]  ;;  %1190 = vmatpush.msrb.mxu1 %v406_v28  ;;  %v3333_v28 = vld [vmem:[%s4108_s0 + $0xc8] sm:$0xff] }
 0x11f   :  { %v534_v24 = vld [vmem:[%s4107_s1 + $0xf10] sm:$0xff]  ;;  %1220 = vmatpush.msrb.mxu2 %v466_v49  ;;  %v3339_v49 = vld [vmem:[%s4108_s0 + $0xd8] sm:$0xff] }
 0x120   :  { %v3233_v56 = vld [vmem:[%s4108_s0 + $0x90] sm:$0xff]  ;;  %1248 = vmatpush.msrb.mxu3 %v534_v24 }
 0x121   :  { %1118 = vmatmul.f32.gmra.mxu2 %v3233_v56  ;;  %v334_v0 = vld [vmem:[%s4107_s1 + $0x8d0] sm:$0xff] }
 0x122   :  { %v402_v1 = vld [vmem:[%s4107_s1 + $0xaf0] sm:$0xff]  ;;  %1163 = vmatpush.msrb.mxu0 %v334_v0 }
 0x123   :  { %v462_v7 = vld [vmem:[%s4107_s1 + $0xcd0] sm:$0xff]  ;;  %1191 = vmatpush.msrb.mxu1 %v402_v1  ;;  %1063 = vmatmul.f32.gmra.mxu0 %v3307_v37 }
 0x124   :  { %v530_v52 = vld [vmem:[%s4107_s1 + $0xef0] sm:$0xff]  ;;  %1221 = vmatpush.msrb.mxu2 %v462_v7  ;;  %1092 = vmatmul.f32.gmra.mxu1 %v3333_v28 }
 0x125   :  { %v330_v44 = vld [vmem:[%s4107_s1 + $0x8b0] sm:$0xff]  ;;  %1249 = vmatpush.msrb.mxu3 %v530_v52  ;;  %v3354_v52 = vpop.f32.mrf.mxu3 }
 0x126   :  { %v398_v13 = vld [vmem:[%s4107_s1 + $0xad0] sm:$0xff]  ;;  %1164 = vmatpush.msrb.mxu0 %v330_v44  ;;  %1150 = vmatmul.f32.gmra.mxu3 %v3339_v49  ;;  %4126 = vst [vmem:[#allocation15_spill] sm:$0xff] %v3354_v52 }
 0x127   :  { %v458_v14 = vld [vmem:[%s4107_s1 + $0xcb0] sm:$0xff]  ;;  %1192 = vmatpush.msrb.mxu1 %v398_v13 }
 0x128   :  { %v526_v23 = vld [vmem:[%s4107_s1 + $0xed0] sm:$0xff]  ;;  %1222 = vmatpush.msrb.mxu2 %v458_v14  ;;  %v3362_v14 = vpop.f32.mrf.mxu0 }
 0x129   :  { %v326_v62 = vld [vmem:[%s4107_s1 + $0x890] sm:$0xff]  ;;  %1250 = vmatpush.msrb.mxu3 %v526_v23 }
 0x12a   :  { %v394_v10 = vld [vmem:[%s4107_s1 + $0xab0] sm:$0xff]  ;;  %1165 = vmatpush.msrb.mxu0 %v326_v62 }
 0x12b   :  { %v454_v30 = vld [vmem:[%s4107_s1 + $0xc90] sm:$0xff]  ;;  %1193 = vmatpush.msrb.mxu1 %v394_v10 }
 0x12c   :  { %v522_v17 = vld [vmem:[%s4107_s1 + $0xeb0] sm:$0xff]  ;;  %1223 = vmatpush.msrb.mxu2 %v454_v30 }
 0x12d   :  { %v322_v4 = vld [vmem:[%s4107_s1 + $0x870] sm:$0xff]  ;;  %1251 = vmatpush.msrb.mxu3 %v522_v17  ;;  %v3376_v17 = vpop.f32.mrf.mxu1 }
 0x12e   :  { %v390_v3 = vld [vmem:[%s4107_s1 + $0xa90] sm:$0xff]  ;;  %1166 = vmatpush.msrb.mxu0 %v322_v4  ;;  %4127 = vst [vmem:[#allocation16_spill] sm:$0xff] %v3376_v17  ;;  %v115_v4 = vld [vmem:[%s4107_s1 + $0x1f8] sm:$0xff] }
 0x12f   :  { %v450_v35 = vld [vmem:[%s4107_s1 + $0xc70] sm:$0xff]  ;;  %1194 = vmatpush.msrb.mxu1 %v390_v3  ;;  %v243_v3 = vld [vmem:[%s4107_s1 + $0x5f8] sm:$0xff] }
 0x130   :  { %v518_v36 = vld [vmem:[%s4107_s1 + $0xe90] sm:$0xff]  ;;  %1224 = vmatpush.msrb.mxu2 %v450_v35  ;;  %v3387_v35 = vld [vmem:[%s4108_s0 + $0x20] sm:$0xff] }
 0x131   :  { %v3313_v40 = vld [vmem:[%s4108_s0 + $0xd0] sm:$0xff]  ;;  %1252 = vmatpush.msrb.mxu3 %v518_v36 }
 0x132   :  { %1121 = vmatmul.f32.gmra.mxu2 %v3313_v40  ;;  %v318_v43 = vld [vmem:[%s4107_s1 + $0x850] sm:$0xff] }
 0x133   :  { %v386_v48 = vld [vmem:[%s4107_s1 + $0xa70] sm:$0xff]  ;;  %1167 = vmatpush.msrb.mxu0 %v318_v43  ;;  %v111_v43 = vld [vmem:[%s4107_s1 + $0x1d8] sm:$0xff] }
 0x134   :  { %v446_v51 = vld [vmem:[%s4107_s1 + $0xc50] sm:$0xff]  ;;  %1195 = vmatpush.msrb.mxu1 %v386_v48  ;;  %v179_v48 = vld [vmem:[%s4107_s1 + $0x3f8] sm:$0xff] }
 0x135   :  { %v514_v18 = vld [vmem:[%s4107_s1 + $0xe70] sm:$0xff]  ;;  %1225 = vmatpush.msrb.mxu2 %v446_v51  ;;  %v3402_v51 = vpop.f32.mrf.mxu2 }
 0x136   :  { %v314_v24 = vld [vmem:[%s4107_s1 + $0x830] sm:$0xff]  ;;  %1253 = vmatpush.msrb.mxu3 %v514_v18  ;;  %4128 = vst [vmem:[#allocation17_spill] sm:$0xff] %v3402_v51  ;;  %v3407_v18 = vld [vmem:[%s4109_s2] sm:$0xf] }
 0x137   :  { %v382_v0 = vld [vmem:[%s4107_s1 + $0xa50] sm:$0xff]  ;;  %1168 = vmatpush.msrb.mxu0 %v314_v24  ;;  %v239_v24 = vld [vmem:[%s4107_s1 + $0x5d8] sm:$0xff] }
 0x138   :  { %v442_v1 = vld [vmem:[%s4107_s1 + $0xc30] sm:$0xff]  ;;  %1196 = vmatpush.msrb.mxu1 %v382_v0  ;;  %v307_v0 = vld [vmem:[%s4107_s1 + $0x7f8] sm:$0xff] }
 0x139   :  { %v510_v7 = vld [vmem:[%s4107_s1 + $0xe50] sm:$0xff]  ;;  %1226 = vmatpush.msrb.mxu2 %v442_v1  ;;  %v3418_v1 = vld [vmem:[%s4108_s0 + $0x28] sm:$0xff] }
 0x13a   :  { %v310_v44 = vld [vmem:[%s4107_s1 + $0x810] sm:$0xff]  ;;  %1254 = vmatpush.msrb.mxu3 %v510_v7  ;;  %v3424_v7 = vld [vmem:[%s4108_s0 + $0x38] sm:$0xff] }
 0x13b   :  { %v378_v13 = vld [vmem:[%s4107_s1 + $0xa30] sm:$0xff]  ;;  %1169 = vmatpush.msrb.mxu0 %v310_v44  ;;  %v107_v44 = vld [vmem:[%s4107_s1 + $0x1b8] sm:$0xff] }
 0x13c   :  { %v438_v23 = vld [vmem:[%s4107_s1 + $0xc10] sm:$0xff]  ;;  %1197 = vmatpush.msrb.mxu1 %v378_v13  ;;  %1170 = vmatmul.f32.vlgmr.msrb.gmra.mxu0 %v3387_v35  ;;  %v175_v13 = vld [vmem:[%s4107_s1 + $0x3d8] sm:$0xff] }
 0x13d   :  { %v506_v62 = vld [vmem:[%s4107_s1 + $0xe30] sm:$0xff]  ;;  %1227 = vmatpush.msrb.mxu2 %v438_v23  ;;  %1270 = vmatpush.msra.mxu0 %v115_v4  ;;  %v3434_v23 = vperm.slane %v3407_v18, 1  ;;  %v103_v4 = vld [vmem:[%s4107_s1 + $0x198] sm:$0xff] }
 0x13e   :  { %v374_v10 = vld [vmem:[%s4107_s1 + $0xa10] sm:$0xff]  ;;  %1255 = vmatpush.msrb.mxu3 %v506_v62  ;;  %v235_v62 = vld [vmem:[%s4107_s1 + $0x5b8] sm:$0xff] }
 0x13f   :  { %v502_v30 = vld [vmem:[%s4107_s1 + $0xe10] sm:$0xff]  ;;  %1198 = vmatpush.msrb.mxu1 %v374_v10  ;;  %1328 = vmatpush.msra.mxu2 %v243_v3  ;;  %v303_v10 = vld [vmem:[%s4107_s1 + $0x7d8] sm:$0xff] }
 0x140   :  { %v3393_v36 = vld [vmem:[%s4108_s0 + $0x30] sm:$0xff]  ;;  %1256 = vmatpush.msrb.mxu3 %v502_v30  ;;  %1199 = vmatmul.f32.vlgmr.msrb.gmra.mxu1 %v3418_v1  ;;  %v3442_v30 = vpop.f32.mrf.mxu3  ;;  %v171_v3 = vld [vmem:[%s4107_s1 + $0x3b8] sm:$0xff] }
 0x141   :  { %1228 = vmatmul.f32.vlgmr.msrb.gmra.mxu2 %v3393_v36  ;;  %1257 = vmatmul.f32.vlgmr.msrb.gmra.mxu3 %v3424_v7  ;;  %4129 = vst [vmem:[#allocation18_spill] sm:$0xff] %v3442_v30  ;;  %v271_v30 = vld [vmem:[%s4107_s1 + $0x6d8] sm:$0xff] }
 0x142   :  { %1271 = vmatpush.msra.mxu0 %v111_v43  ;;  %1299 = vmatpush.msra.mxu1 %v179_v48  ;;  %v823_v43 = vpop.f32.mrf.mxu0  ;;  %v231_v48 = vld [vmem:[%s4107_s1 + $0x598] sm:$0xff] }
 0x143   :  { %1329 = vmatpush.msra.mxu2 %v239_v24  ;;  %1357 = vmatpush.msra.mxu3 %v307_v0  ;;  %v299_v24 = vld [vmem:[%s4107_s1 + $0x7b8] sm:$0xff]  ;;  %v824_v0 = vadd.f32 %v823_v43, %v3434_v23 }
 0x144   :  { %1272 = vmatpush.msra.mxu0 %v107_v44  ;;  %1300 = vmatpush.msra.mxu1 %v175_v13  ;;  %v167_v44 = vld [vmem:[%s4107_s1 + $0x398] sm:$0xff]  ;;  %v852_v13 = vpop.f32.mrf.mxu1 }
 0x145   :  { %1330 = vmatpush.msra.mxu2 %v235_v62  ;;  %1358 = vmatpush.msra.mxu3 %v303_v10  ;;  %v295_v62 = vld [vmem:[%s4107_s1 + $0x798] sm:$0xff]  ;;  %v853_v10 = vadd.f32 %v852_v13, %v824_v0  ;;  %v3496_v13 = vld [vmem:[%s4108_s0 + $0x68] sm:$0xff] }
 0x146   :  { %1273 = vmatpush.msra.mxu0 %v103_v4  ;;  %1301 = vmatpush.msra.mxu1 %v171_v3  ;;  %v3472_v4 = vld [vmem:[%s4108_s0 + $0x60] sm:$0xff]  ;;  %v3478_v3 = vld [vmem:[%s4108_s0 + $0x70] sm:$0xff]  ;;  %v95_v43 = vld [vmem:[%s4107_s1 + $0x158] sm:$0xff] }
 0x147   :  { %1331 = vmatpush.msra.mxu2 %v231_v48  ;;  %1359 = vmatpush.msra.mxu3 %v299_v24  ;;  %v163_v48 = vld [vmem:[%s4107_s1 + $0x378] sm:$0xff]  ;;  %v881_v24 = vpop.f32.mrf.mxu2 }
 0x148   :  { %1173 = vmatmul.f32.gmra.mxu0 %v3472_v4  ;;  %1302 = vmatpush.msra.mxu1 %v167_v44  ;;  %v223_v0 = vld [vmem:[%s4107_s1 + $0x558] sm:$0xff]  ;;  %v882_v44 = vadd.f32 %v881_v24, %v853_v10  ;;  %v910_v52 = vpop.f32.mrf.mxu3 }
 0x149   :  { %1231 = vmatmul.f32.gmra.mxu2 %v3478_v3  ;;  %1274 = vmatpush.msra.mxu0 %v99_v41  ;;  %v291_v41 = vld [vmem:[%s4107_s1 + $0x778] sm:$0xff] }
 0x14a   :  { %1332 = vmatpush.msra.mxu2 %v227_v26  ;;  %1360 = vmatpush.msra.mxu3 %v295_v62  ;;  %v3502_v26 = vld [vmem:[%s4108_s0 + $0x78] sm:$0xff]  ;;  %v3523_v11 = vadd.f32 %v910_v52, %v882_v44 }
 0x14b   :  { %1202 = vmatmul.f32.gmra.mxu1 %v3496_v13  ;;  %1260 = vmatmul.f32.gmra.mxu3 %v3502_v26  ;;  %v91_v62 = vld [vmem:[%s4107_s1 + $0x138] sm:$0xff] }
 0x14c   :  { %v159_v10 = vld [vmem:[%s4107_s1 + $0x358] sm:$0xff]  ;;  %1275 = vmatpush.msra.mxu0 %v95_v43  ;;  %1303 = vmatpush.msra.mxu1 %v163_v48  ;;  %v826_v48 = vpop.f32.mrf.mxu0 }
 0x14d   :  { %v219_v24 = vld [vmem:[%s4107_s1 + $0x538] sm:$0xff]  ;;  %1333 = vmatpush.msra.mxu2 %v223_v0  ;;  %1361 = vmatpush.msra.mxu3 %v291_v41  ;;  %v827_v41 = vadd.f32 %v826_v48, %v3434_v23 }
 0x14e   :  { %v155_v43 = vld [vmem:[%s4107_s1 + $0x338] sm:$0xff]  ;;  %1276 = vmatpush.msra.mxu0 %v91_v62  ;;  %1304 = vmatpush.msra.mxu1 %v159_v10  ;;  %v855_v62 = vpop.f32.mrf.mxu1 }
 0x14f   :  { %v283_v0 = vld [vmem:[%s4107_s1 + $0x738] sm:$0xff]  ;;  %1334 = vmatpush.msra.mxu2 %v219_v24  ;;  %1362 = vmatpush.msra.mxu3 %v287_v2  ;;  %v3547_v24 = vld [vmem:[%s4108_s0 + $0xa0] sm:$0xff] }
 0x150   :  { %1277 = vmatpush.msra.mxu0 %v87_v47  ;;  %1305 = vmatpush.msra.mxu1 %v155_v43  ;;  %v83_v52 = vld [vmem:[%s4107_s1 + $0xf8] sm:$0xff]  ;;  %v856_v47 = vadd.f32 %v855_v62, %v827_v41  ;;  %v3571_v62 = vld [vmem:[%s4108_s0 + $0xa8] sm:$0xff]  ;;  %v913_v50 = vpop.f32.mrf.mxu3 }
 0x151   :  { %v151_v44 = vld [vmem:[%s4107_s1 + $0x318] sm:$0xff]  ;;  %1335 = vmatpush.msra.mxu2 %v215_v29  ;;  %1363 = vmatpush.msra.mxu3 %v283_v0  ;;  %v3553_v29 = vld [vmem:[%s4108_s0 + $0xb0] sm:$0xff]  ;;  %v884_v0 = vpop.f32.mrf.mxu2 }
 0x152   :  { %v211_v10 = vld [vmem:[%s4107_s1 + $0x4f8] sm:$0xff]  ;;  %1176 = vmatmul.f32.gmra.mxu0 %v3547_v24  ;;  %1234 = vmatmul.f32.gmra.mxu2 %v3553_v29 }
 0x153   :  { %v279_v2 = vld [vmem:[%s4107_s1 + $0x718] sm:$0xff]  ;;  %1278 = vmatpush.msra.mxu0 %v83_v52  ;;  %1306 = vmatpush.msra.mxu1 %v151_v44  ;;  %v885_v44 = vadd.f32 %v884_v0, %v856_v47 }
 0x154   :  { %v79_v43 = vld [vmem:[%s4107_s1 + $0xd8] sm:$0xff]  ;;  %1336 = vmatpush.msra.mxu2 %v211_v10  ;;  %1364 = vmatpush.msra.mxu3 %v279_v2 }
 0x155   :  { %v147_v48 = vld [vmem:[%s4107_s1 + $0x2f8] sm:$0xff]  ;;  %1205 = vmatmul.f32.gmra.mxu1 %v3571_v62  ;;  %1279 = vmatpush.msra.mxu0 %v79_v43  ;;  %v3598_v31 = vadd.f32 %v913_v50, %v885_v44 }
 0x156   :  { %v207_v41 = vld [vmem:[%s4107_s1 + $0x4d8] sm:$0xff]  ;;  %1307 = vmatpush.msra.mxu1 %v147_v48  ;;  %v829_v48 = vpop.f32.mrf.mxu0 }
 0x157   :  { %v275_v52 = vld [vmem:[%s4107_s1 + $0x6f8] sm:$0xff]  ;;  %1337 = vmatpush.msra.mxu2 %v207_v41 }
 0x158   :  { %v3577_v10 = vld [vmem:[%s4108_s0 + $0xb8] sm:$0xff]  ;;  %1365 = vmatpush.msra.mxu3 %v275_v52  ;;  %v830_v52 = vadd.f32 %v829_v48, %v3434_v23  ;;  %v916_v51 = vpop.f32.mrf.mxu3 }
 0x159   :  { %1263 = vmatmul.f32.gmra.mxu3 %v3577_v10  ;;  %v75_v2 = vld [vmem:[%s4107_s1 + $0xb8] sm:$0xff] }
 0x15a   :  { %v143_v47 = vld [vmem:[%s4107_s1 + $0x2d8] sm:$0xff]  ;;  %1280 = vmatpush.msra.mxu0 %v75_v2  ;;  %1366 = vmatpush.msra.mxu3 %v271_v30  ;;  %v858_v2 = vpop.f32.mrf.mxu1 }
 0x15b   :  { %v203_v0 = vld [vmem:[%s4107_s1 + $0x4b8] sm:$0xff]  ;;  %1308 = vmatpush.msra.mxu1 %v143_v47  ;;  %v859_v30 = vadd.f32 %v858_v2, %v830_v52  ;;  %v3646_v2 = vld [vmem:[%s4108_s0 + $0xe8] sm:$0xff] }
 0x15c   :  { %v139_v43 = vld [vmem:[%s4107_s1 + $0x2b8] sm:$0xff]  ;;  %1338 = vmatpush.msra.mxu2 %v203_v0  ;;  %1281 = vmatpush.msra.mxu0 %v71_v22  ;;  %v3622_v0 = vld [vmem:[%s4108_s0 + $0xe0] sm:$0xff] }
 0x15d   :  { %v267_v41 = vld [vmem:[%s4107_s1 + $0x6b8] sm:$0xff]  ;;  %1309 = vmatpush.msra.mxu1 %v139_v43  ;;  %1179 = vmatmul.f32.gmra.mxu0 %v3622_v0 }
 0x15e   :  { %v67_v50 = vld [vmem:[%s4107_s1 + $0x78] sm:$0xff]  ;;  %1339 = vmatpush.msra.mxu2 %v199_v20  ;;  %1367 = vmatpush.msra.mxu3 %v267_v41  ;;  %v3628_v20 = vld [vmem:[%s4108_s0 + $0xf0] sm:$0xff]  ;;  %v887_v41 = vpop.f32.mrf.mxu2 }
 0x15f   :  { %v135_v44 = vld [vmem:[%s4107_s1 + $0x298] sm:$0xff]  ;;  %1237 = vmatmul.f32.gmra.mxu2 %v3628_v20  ;;  %1282 = vmatpush.msra.mxu0 %v67_v50 }
 0x160   :  { %v195_v47 = vld [vmem:[%s4107_s1 + $0x478] sm:$0xff]  ;;  %1310 = vmatpush.msra.mxu1 %v135_v44  ;;  %v888_v44 = vadd.f32 %v887_v41, %v859_v30 }
 0x161   :  { %v263_v22 = vld [vmem:[%s4107_s1 + $0x698] sm:$0xff]  ;;  %1340 = vmatpush.msra.mxu2 %v195_v47  ;;  %1208 = vmatmul.f32.gmra.mxu1 %v3646_v2 }
 0x162   :  { %v63_v43 = vld [vmem:[%s4107_s1 + $0x58] sm:$0xff]  ;;  %1368 = vmatpush.msra.mxu3 %v263_v22  ;;  %v3673_v17 = vadd.f32 %v916_v51, %v888_v44 }
 0x163   :  { %v131_v48 = vld [vmem:[%s4107_s1 + $0x278] sm:$0xff]  ;;  %1283 = vmatpush.msra.mxu0 %v63_v43 }
 0x164   :  { %v191_v52 = vld [vmem:[%s4107_s1 + $0x458] sm:$0xff]  ;;  %1311 = vmatpush.msra.mxu1 %v131_v48  ;;  %v832_v48 = vpop.f32.mrf.mxu0 }
 0x165   :  { %v259_v50 = vld [vmem:[%s4107_s1 + $0x678] sm:$0xff]  ;;  %1341 = vmatpush.msra.mxu2 %v191_v52 }
 0x166   :  { %v3652_v47 = vld [vmem:[%s4108_s0 + $0xf8] sm:$0xff]  ;;  %1369 = vmatpush.msra.mxu3 %v259_v50  ;;  %v833_v50 = vadd.f32 %v832_v48, %v3434_v23 }
 0x167   :  { %1266 = vmatmul.f32.gmra.mxu3 %v3652_v47  ;;  %v59_v22 = vld [vmem:[%s4107_s1 + $0x38] sm:$0xff] }
 0x168   :  { %v127_v30 = vld [vmem:[%s4107_s1 + $0x258] sm:$0xff]  ;;  %1284 = vmatpush.msra.mxu0 %v59_v22  ;;  %1370 = vmatpush.msra.mxu3 %v255_v39  ;;  %v861_v22 = vpop.f32.mrf.mxu1 }
 0x169   :  { %v187_v41 = vld [vmem:[%s4107_s1 + $0x438] sm:$0xff]  ;;  %1312 = vmatpush.msra.mxu1 %v127_v30 }
 0x16a   :  { %v123_v43 = vld [vmem:[%s4107_s1 + $0x238] sm:$0xff]  ;;  %1342 = vmatpush.msra.mxu2 %v187_v41  ;;  %1285 = vmatpush.msra.mxu0 %v55_v59  ;;  %v862_v59 = vadd.f32 %v861_v22, %v833_v50  ;;  %v890_v41 = vpop.f32.mrf.mxu2 }
 0x16b   :  { %v251_v52 = vld [vmem:[%s4107_s1 + $0x638] sm:$0xff]  ;;  %1313 = vmatpush.msra.mxu1 %v123_v43  ;;  %1286 = vmatmul.f32.vlgmr.msra.gmra.mxu0 %v3067_v60 }
 0x16c   :  { %v119_v51 = vld [vmem:[%s4107_s1 + $0x218] sm:$0xff]  ;;  %1343 = vmatpush.msra.mxu2 %v183_v27  ;;  %1371 = vmatpush.msra.mxu3 %v251_v52 }
 0x16d   :  { %v247_v44 = vld [vmem:[%s4107_s1 + $0x618] sm:$0xff]  ;;  %1344 = vmatmul.f32.vlgmr.msra.gmra.mxu2 %v3073_v61  ;;  %1314 = vmatpush.msra.mxu1 %v119_v51  ;;  %v891_v61 = vadd.f32 %v890_v41, %v862_v59  ;;  %v919_v51 = vpop.f32.mrf.mxu3 }
 0x16e   :  { %v371_v30 = vld [vmem:[%s4107_s1 + $0x9f8] sm:$0xff]  ;;  %1372 = vmatpush.msra.mxu3 %v247_v44  ;;  %1315 = vmatmul.f32.vlgmr.msra.gmra.mxu1 %v3093_v8 }
 0x16f   :  { %v499_v39 = vld [vmem:[%s4107_s1 + $0xdf8] sm:$0xff]  ;;  %1386 = vmatpush.msrb.mxu0 %v371_v30  ;;  %1373 = vmatmul.f32.vlgmr.msra.gmra.mxu3 %v3099_v38  ;;  %v3728_v22 = vadd.f32 %v919_v51, %v891_v61  ;;  %v939_v30 = vpop.f32.mrf.mxu0 }
 0x170   :  { %v367_v27 = vld [vmem:[%s4107_s1 + $0x9d8] sm:$0xff]  ;;  %1444 = vmatpush.msrb.mxu2 %v499_v39 }
 0x171   :  { %v435_v23 = vld [vmem:[%s4107_s1 + $0xbf8] sm:$0xff]  ;;  %1387 = vmatpush.msrb.mxu0 %v367_v27  ;;  %v940_v27 = vadd.f32 %v939_v30, %v3523_v11 }
 0x172   :  { %v495_v43 = vld [vmem:[%s4107_s1 + $0xdd8] sm:$0xff]  ;;  %1415 = vmatpush.msrb.mxu1 %v435_v23 }
 0x173   :  { %v563_v60 = vld [vmem:[%s4107_s1 + $0xff8] sm:$0xff]  ;;  %1445 = vmatpush.msrb.mxu2 %v495_v43  ;;  %v968_v43 = vpop.f32.mrf.mxu1  ;;  %1289 = vmatmul.f32.gmra.mxu0 %v3147_v58 }
 0x174   :  { %v363_v48 = vld [vmem:[%s4107_s1 + $0x9b8] sm:$0xff]  ;;  %1473 = vmatpush.msrb.mxu3 %v563_v60  ;;  %v969_v61 = vadd.f32 %v968_v43, %v940_v27 }
 0x175   :  { %v431_v52 = vld [vmem:[%s4107_s1 + $0xbd8] sm:$0xff]  ;;  %1388 = vmatpush.msrb.mxu0 %v363_v48  ;;  %1347 = vmatmul.f32.gmra.mxu2 %v3153_v16  ;;  %v1026_v30 = vpop.f32.mrf.mxu3 }
 0x176   :  { %v491_v50 = vld [vmem:[%s4107_s1 + $0xdb8] sm:$0xff]  ;;  %1416 = vmatpush.msrb.mxu1 %v431_v52 }
 0x177   :  { %v559_v8 = vld [vmem:[%s4107_s1 + $0xfd8] sm:$0xff]  ;;  %1446 = vmatpush.msrb.mxu2 %v491_v50  ;;  %v997_v50 = vpop.f32.mrf.mxu2  ;;  %1318 = vmatmul.f32.gmra.mxu1 %v3173_v32 }
 0x178   :  { %v359_v38 = vld [vmem:[%s4107_s1 + $0x998] sm:$0xff]  ;;  %1474 = vmatpush.msrb.mxu3 %v559_v8  ;;  %v998_v16 = vadd.f32 %v997_v50, %v969_v61 }
 0x179   :  { %v427_v44 = vld [vmem:[%s4107_s1 + $0xbb8] sm:$0xff]  ;;  %1389 = vmatpush.msrb.mxu0 %v359_v38  ;;  %1376 = vmatmul.f32.gmra.mxu3 %v3179_v34 }
 0x17a   :  { %v487_v39 = vld [vmem:[%s4107_s1 + $0xd98] sm:$0xff]  ;;  %1417 = vmatpush.msrb.mxu1 %v427_v44  ;;  %v3783_v27 = vadd.f32 %v1026_v30, %v998_v16 }
 0x17b   :  { %v555_v59 = vld [vmem:[%s4107_s1 + $0xfb8] sm:$0xff]  ;;  %1447 = vmatpush.msrb.mxu2 %v487_v39  ;;  %v971_v61 = vpop.f32.mrf.mxu1  ;;  %1292 = vmatmul.f32.gmra.mxu0 %v3227_v55 }
 0x17c   :  { %v355_v23 = vld [vmem:[%s4107_s1 + $0x978] sm:$0xff]  ;;  %1475 = vmatpush.msrb.mxu3 %v555_v59  ;;  %v942_v59 = vpop.f32.mrf.mxu0 }
 0x17d   :  { %v423_v41 = vld [vmem:[%s4107_s1 + $0xb98] sm:$0xff]  ;;  %1390 = vmatpush.msrb.mxu0 %v355_v23  ;;  %v943_v43 = vadd.f32 %v942_v59, %v3598_v31  ;;  %1350 = vmatmul.f32.gmra.mxu2 %v3233_v56 }
 0x17e   :  { %v483_v60 = vld [vmem:[%s4107_s1 + $0xd78] sm:$0xff]  ;;  %1418 = vmatpush.msrb.mxu1 %v423_v41 }
 0x17f   :  { %v551_v11 = vld [vmem:[%s4107_s1 + $0xf98] sm:$0xff]  ;;  %1448 = vmatpush.msrb.mxu2 %v483_v60  ;;  %1321 = vmatmul.f32.gmra.mxu1 %v3253_v53 }
 0x180   :  { %v351_v48 = vld [vmem:[%s4107_s1 + $0x958] sm:$0xff]  ;;  %1476 = vmatpush.msrb.mxu3 %v551_v11 }
 0x181   :  { %v419_v52 = vld [vmem:[%s4107_s1 + $0xb78] sm:$0xff]  ;;  %1391 = vmatpush.msrb.mxu0 %v351_v48  ;;  %1379 = vmatmul.f32.gmra.mxu3 %v3259_v9 }
 0x182   :  { %v479_v8 = vld [vmem:[%s4107_s1 + $0xd58] sm:$0xff]  ;;  %1419 = vmatpush.msrb.mxu1 %v419_v52  ;;  %v972_v52 = vadd.f32 %v971_v61, %v943_v43 }
 0x183   :  { %v547_v58 = vld [vmem:[%s4107_s1 + $0xf78] sm:$0xff]  ;;  %1449 = vmatpush.msrb.mxu2 %v479_v8  ;;  %1295 = vmatmul.f32.gmra.mxu0 %v3307_v37 }
 0x184   :  { %v347_v51 = vld [vmem:[%s4107_s1 + $0x938] sm:$0xff]  ;;  %1477 = vmatpush.msrb.mxu3 %v547_v58  ;;  %v1000_v58 = vpop.f32.mrf.mxu2 }
 0x185   :  { %v415_v38 = vld [vmem:[%s4107_s1 + $0xb58] sm:$0xff]  ;;  %1392 = vmatpush.msrb.mxu0 %v347_v51  ;;  %v1001_v56 = vadd.f32 %v1000_v58, %v972_v52  ;;  %1353 = vmatmul.f32.gmra.mxu2 %v3313_v40 }
 0x186   :  { %v475_v44 = vld [vmem:[%s4107_s1 + $0xd38] sm:$0xff]  ;;  %1420 = vmatpush.msrb.mxu1 %v415_v38 }
 0x187   :  { %v543_v32 = vld [vmem:[%s4107_s1 + $0xf58] sm:$0xff]  ;;  %1450 = vmatpush.msrb.mxu2 %v475_v44  ;;  %1324 = vmatmul.f32.gmra.mxu1 %v3333_v28 }
 0x188   :  { %v343_v34 = vld [vmem:[%s4107_s1 + $0x918] sm:$0xff]  ;;  %1478 = vmatpush.msrb.mxu3 %v543_v32  ;;  %v1029_v32 = vpop.f32.mrf.mxu3 }
 0x189   :  { %v411_v39 = vld [vmem:[%s4107_s1 + $0xb38] sm:$0xff]  ;;  %1393 = vmatpush.msrb.mxu0 %v343_v34  ;;  %v945_v34 = vpop.f32.mrf.mxu0  ;;  %1382 = vmatmul.f32.gmra.mxu3 %v3339_v49 }
 0x18a   :  { %v471_v23 = vld [vmem:[%s4107_s1 + $0xd18] sm:$0xff]  ;;  %1421 = vmatpush.msrb.mxu1 %v411_v39  ;;  %v3838_v39 = vadd.f32 %v1029_v32, %v1001_v56 }
 0x18b   :  { %v539_v41 = vld [vmem:[%s4107_s1 + $0xf38] sm:$0xff]  ;;  %1451 = vmatpush.msrb.mxu2 %v471_v23 }
 0x18c   :  { %v339_v60 = vld [vmem:[%s4107_s1 + $0x8f8] sm:$0xff]  ;;  %1479 = vmatpush.msrb.mxu3 %v539_v41  ;;  %v946_v41 = vadd.f32 %v945_v34, %v3673_v17 }
 0x18d   :  { %v407_v11 = vld [vmem:[%s4107_s1 + $0xb18] sm:$0xff]  ;;  %1394 = vmatpush.msrb.mxu0 %v339_v60 }
 0x18e   :  { %v467_v48 = vld [vmem:[%s4107_s1 + $0xcf8] sm:$0xff]  ;;  %1422 = vmatpush.msrb.mxu1 %v407_v11  ;;  %v974_v11 = vpop.f32.mrf.mxu1 }
 0x18f   :  { %v535_v31 = vld [vmem:[%s4107_s1 + $0xf18] sm:$0xff]  ;;  %1452 = vmatpush.msrb.mxu2 %v467_v48  ;;  %v975_v48 = vadd.f32 %v974_v11, %v946_v41 }
 0x190   :  { %v335_v50 = vld [vmem:[%s4107_s1 + $0x8d8] sm:$0xff]  ;;  %1480 = vmatpush.msrb.mxu3 %v535_v31  ;;  %v1032_v56 = vpop.f32.mrf.mxu3 }
 0x191   :  { %v403_v8 = vld [vmem:[%s4107_s1 + $0xaf8] sm:$0xff]  ;;  %1395 = vmatpush.msrb.mxu0 %v335_v50  ;;  %v1003_v50 = vpop.f32.mrf.mxu2 }
 0x192   :  { %v463_v16 = vld [vmem:[%s4107_s1 + $0xcd8] sm:$0xff]  ;;  %1423 = vmatpush.msrb.mxu1 %v403_v8  ;;  %v1004_v40 = vadd.f32 %v1003_v50, %v975_v48 }
 0x193   :  { %v531_v55 = vld [vmem:[%s4107_s1 + $0xef8] sm:$0xff]  ;;  %1453 = vmatpush.msrb.mxu2 %v463_v16 }
 0x194   :  { %v331_v51 = vld [vmem:[%s4107_s1 + $0x8b8] sm:$0xff]  ;;  %1481 = vmatpush.msrb.mxu3 %v531_v55 }
 0x195   :  { %v399_v38 = vld [vmem:[%s4107_s1 + $0xad8] sm:$0xff]  ;;  %1396 = vmatpush.msrb.mxu0 %v331_v51 }
 0x196   :  { %v459_v44 = vld [vmem:[%s4107_s1 + $0xcb8] sm:$0xff]  ;;  %1424 = vmatpush.msrb.mxu1 %v399_v38  ;;  %v948_v38 = vpop.f32.mrf.mxu0 }
 0x197   :  { %v527_v53 = vld [vmem:[%s4107_s1 + $0xed8] sm:$0xff]  ;;  %1454 = vmatpush.msrb.mxu2 %v459_v44  ;;  %v3893_v44 = vadd.f32 %v1032_v56, %v1004_v40 }
 0x198   :  { %v327_v9 = vld [vmem:[%s4107_s1 + $0x898] sm:$0xff]  ;;  %1482 = vmatpush.msrb.mxu3 %v527_v53 }
 0x199   :  { %v395_v30 = vld [vmem:[%s4107_s1 + $0xab8] sm:$0xff]  ;;  %1397 = vmatpush.msrb.mxu0 %v327_v9  ;;  %v949_v9 = vadd.f32 %v948_v38, %v3728_v22  ;;  %v1006_v22 = vpop.f32.mrf.mxu2 }
 0x19a   :  { %v455_v59 = vld [vmem:[%s4107_s1 + $0xc98] sm:$0xff]  ;;  %1425 = vmatpush.msrb.mxu1 %v395_v30 }
 0x19b   :  { %v523_v23 = vld [vmem:[%s4107_s1 + $0xeb8] sm:$0xff]  ;;  %1455 = vmatpush.msrb.mxu2 %v455_v59  ;;  %v977_v59 = vpop.f32.mrf.mxu1 }
 0x19c   :  { %v323_v43 = vld [vmem:[%s4107_s1 + $0x878] sm:$0xff]  ;;  %1483 = vmatpush.msrb.mxu3 %v523_v23  ;;  %v978_v23 = vadd.f32 %v977_v59, %v949_v9 }
 0x19d   :  { %v391_v60 = vld [vmem:[%s4107_s1 + $0xa98] sm:$0xff]  ;;  %1398 = vmatpush.msrb.mxu0 %v323_v43  ;;  %v1035_v43 = vpop.f32.mrf.mxu3 }
 0x19e   :  { %v451_v61 = vld [vmem:[%s4107_s1 + $0xc78] sm:$0xff]  ;;  %1426 = vmatpush.msrb.mxu1 %v391_v60  ;;  %v1007_v41 = vadd.f32 %v1006_v22, %v978_v23  ;;  %v1055_v11 = vpop.f32.mrf.mxu0 }
 0x19f   :  { %v519_v17 = vld [vmem:[%s4107_s1 + $0xe98] sm:$0xff]  ;;  %1456 = vmatpush.msrb.mxu2 %v451_v61 }
 0x1a0   :  { %v319_v31 = vld [vmem:[%s4107_s1 + $0x858] sm:$0xff]  ;;  %1484 = vmatpush.msrb.mxu3 %v519_v17  ;;  %v3912_v60 = vadd.f32 %v1035_v43, %v1007_v41 }
 0x1a1   :  { %v387_v52 = vld [vmem:[%s4107_s1 + $0xa78] sm:$0xff]  ;;  %1399 = vmatpush.msrb.mxu0 %v319_v31 }
 0x1a2   :  { %v447_v8 = vld [vmem:[%s4107_s1 + $0xc58] sm:$0xff]  ;;  %1427 = vmatpush.msrb.mxu1 %v387_v52 }
 0x1a3   :  { %v515_v37 = vld [vmem:[%s4107_s1 + $0xe78] sm:$0xff]  ;;  %1457 = vmatpush.msrb.mxu2 %v447_v8  ;;  %v1084_v61 = vpop.f32.mrf.mxu1 }
 0x1a4   :  { %v315_v58 = vld [vmem:[%s4107_s1 + $0x838] sm:$0xff]  ;;  %1485 = vmatpush.msrb.mxu3 %v515_v37 }
 0x1a5   :  { %v383_v16 = vld [vmem:[%s4107_s1 + $0xa58] sm:$0xff]  ;;  %1400 = vmatpush.msrb.mxu0 %v315_v58 }
 0x1a6   :  { %v443_v55 = vld [vmem:[%s4107_s1 + $0xc38] sm:$0xff]  ;;  %1428 = vmatpush.msrb.mxu1 %v383_v16  ;;  %v1058_v17 = vpop.f32.mrf.mxu0 }
 0x1a7   :  { %v511_v28 = vld [vmem:[%s4107_s1 + $0xe58] sm:$0xff]  ;;  %1458 = vmatpush.msrb.mxu2 %v443_v55 }
 0x1a8   :  { %v311_v49 = vld [vmem:[%s4107_s1 + $0x818] sm:$0xff]  ;;  %1486 = vmatpush.msrb.mxu3 %v511_v28 }
 0x1a9   :  { %v379_v51 = vld [vmem:[%s4107_s1 + $0xa38] sm:$0xff]  ;;  %1401 = vmatpush.msrb.mxu0 %v311_v49 }
 0x1aa   :  { %v439_v53 = vld [vmem:[%s4107_s1 + $0xc18] sm:$0xff]  ;;  %1429 = vmatpush.msrb.mxu1 %v379_v51  ;;  %1402 = vmatmul.f32.vlgmr.msrb.gmra.mxu0 %v3387_v35  ;;  %v1113_v35 = vpop.f32.mrf.mxu2 }
 0x1ab   :  { %v507_v32 = vld [vmem:[%s4107_s1 + $0xe38] sm:$0xff]  ;;  %1459 = vmatpush.msrb.mxu2 %v439_v53 }
 0x1ac   :  { %v375_v30 = vld [vmem:[%s4107_s1 + $0xa18] sm:$0xff]  ;;  %1487 = vmatpush.msrb.mxu3 %v507_v32  ;;  %1460 = vmatmul.f32.vlgmr.msrb.gmra.mxu2 %v3393_v36  ;;  %v1142_v36 = vpop.f32.mrf.mxu3 }
 0x1ad   :  { %v503_v34 = vld [vmem:[%s4107_s1 + $0xe18] sm:$0xff]  ;;  %1430 = vmatpush.msrb.mxu1 %v375_v30 }
 0x1ae   :  { %1488 = vmatpush.msrb.mxu3 %v503_v34  ;;  %1431 = vmatmul.f32.vlgmr.msrb.gmra.mxu1 %v3418_v1  ;;  %v1087_v1 = vpop.f32.mrf.mxu1 }
 0x1af   :  { %1489 = vmatmul.f32.vlgmr.msrb.gmra.mxu3 %v3424_v7 }
 0x1b2   :  { %1405 = vmatmul.f32.gmra.mxu0 %v3472_v4  ;;  %v1116_v7 = vpop.f32.mrf.mxu2 }
 0x1b4   :  { %1463 = vmatmul.f32.gmra.mxu2 %v3478_v3  ;;  %v1145_v4 = vpop.f32.mrf.mxu3  ;;  %v1061_v3 = vpop.f32.mrf.mxu0 }
 0x1b6   :  { %1434 = vmatmul.f32.gmra.mxu1 %v3496_v13  ;;  %v1090_v13 = vpop.f32.mrf.mxu1 }
 0x1b7   :  { %1492 = vmatmul.f32.gmra.mxu3 %v3502_v26 }
 0x1ba   :  { %1408 = vmatmul.f32.gmra.mxu0 %v3547_v24  ;;  %v1119_v26 = vpop.f32.mrf.mxu2 }
 0x1bc   :  { %1466 = vmatmul.f32.gmra.mxu2 %v3553_v29  ;;  %v1148_v24 = vpop.f32.mrf.mxu3  ;;  %v1064_v29 = vpop.f32.mrf.mxu0 }
 0x1be   :  { %1437 = vmatmul.f32.gmra.mxu1 %v3571_v62  ;;  %v1093_v48 = vpop.f32.mrf.mxu1 }
 0x1bf   :  { %1495 = vmatmul.f32.gmra.mxu3 %v3577_v10  ;;  %v568_v10 = vperm.slane %v3407_v18, 2 }
 0x1c1   :  { %v1059_v50 = vadd.f32 %v1058_v17, %v568_v10  ;;  %v1056_v8 = vadd.f32 %v1055_v11, %v568_v10  ;;  %v1062_v40 = vadd.f32 %v1061_v3, %v568_v10  ;;  %v1065_v9 = vadd.f32 %v1064_v29, %v568_v10 }
 0x1c2   :  { %1411 = vmatmul.f32.gmra.mxu0 %v3622_v0  ;;  %v1122_v62 = vpop.f32.mrf.mxu2 }
 0x1c3   :  { %v1085_v58 = vadd.f32 %v1084_v61, %v1056_v8  ;;  %v1091_v55 = vadd.f32 %v1090_v13, %v1062_v40  ;;  %v1094_v41 = vadd.f32 %v1093_v48, %v1065_v9  ;;  %v566_v8 = vperm.slane %v3407_v18, 0 }
 0x1c4   :  { %1469 = vmatmul.f32.gmra.mxu2 %v3628_v20  ;;  %v1151_v31 = vpop.f32.mrf.mxu3  ;;  %v1171_v52 = vpop.f32.mrf.mxu0  ;;  %v1088_v20 = vadd.f32 %v1087_v1, %v1059_v50 }
 0x1c5   :  { %v1114_v28 = vadd.f32 %v1113_v35, %v1085_v58  ;;  %v1120_v51 = vadd.f32 %v1119_v26, %v1091_v55  ;;  %v1123_v1 = vadd.f32 %v1122_v62, %v1094_v41  ;;  %v601_v62 = vadd.f32 %v3042_v19, %v566_v8 }
 0x1c6   :  { %1440 = vmatmul.f32.gmra.mxu1 %v3646_v2  ;;  %v1200_v0 = vpop.f32.mrf.mxu1  ;;  %v1117_v2 = vadd.f32 %v1116_v7, %v1088_v20 }
 0x1c7   :  { %1498 = vmatmul.f32.gmra.mxu3 %v3652_v47  ;;  %v1143_v32 = vadd.f32 %v1142_v36, %v1114_v28  ;;  %v1149_v30 = vadd.f32 %v1148_v24, %v1120_v51  ;;  %v1152_v26 = vadd.f32 %v1151_v31, %v1123_v1  ;;  %v598_v31 = vadd.f32 %v2982_v5, %v566_v8 }
 0x1c8   :  { %v1146_v56 = vadd.f32 %v1145_v4, %v1117_v2  ;;  %v630_v2 = vadd.f32 %v3056_v25, %v601_v62  ;;  %v592_v25 = vadd.f32 %v2862_v54, %v566_v8  ;;  %v4139_v62 = vld [vmem:[#allocation18_spill] sm:$0xff] }
 0x1c9   :  { %v1172_v34 = vadd.f32 %v1171_v52, %v1143_v32  ;;  %v627_v19 = vadd.f32 %v2996_v33, %v598_v31 }
 0x1ca   :  { %v1229_v37 = vpop.f32.mrf.mxu2  ;;  %v659_v51 = vadd.f32 %v3082_v46, %v630_v2 }
 0x1cb   :  { %v1201_v61 = vadd.f32 %v1200_v0, %v1172_v34  ;;  %v621_v34 = vadd.f32 %v2876_v57, %v592_v25  ;;  %v4130_v57 = vld [vmem:[#allocation12_spill] sm:$0xff]  ;;  %v4143_v25 = vld [vmem:[#allocation15_spill] sm:$0xff] }
 0x1cc   :  { %v1258_v16 = vpop.f32.mrf.mxu3  ;;  %v1174_v47 = vpop.f32.mrf.mxu0 }
 0x1cd   :  { %v1175_v38 = vadd.f32 %v1174_v47, %v1146_v56  ;;  %v1230_v7 = vadd.f32 %v1229_v37, %v1201_v61  ;;  %v595_v56 = vadd.f32 %v2922_v12, %v566_v8  ;;  %v656_v12 = vadd.f32 %v3012_v42, %v627_v19  ;;  %v4131_v61 = vld [vmem:[#allocation16_spill] sm:$0xff]  ;;  %v4141_v19 = vld [vmem:[#allocation5_spill] sm:$0xff] }
 0x1ce   :  { %v1203_v49 = vpop.f32.mrf.mxu1  ;;  %v650_v41 = vadd.f32 %v2892_v6, %v621_v34  ;;  %v4137_v8 = vld [vmem:[#allocation4_spill] sm:$0xff] }
 0x1cf   :  { %v1204_v59 = vadd.f32 %v1203_v49, %v1175_v38  ;;  %v1259_v50 = vadd.f32 %v1258_v16, %v1230_v7  ;;  %v624_v9 = vadd.f32 %v2936_v15, %v595_v56  ;;  %v685_v42 = vadd.f32 %v3034_v21, %v656_v12  ;;  %v4132_v21 = vld [vmem:[#allocation3_spill] sm:$0xff] }
 0x1d1   :  { %v1724_v20 = vmul.f32 -1.442695, %v1259_v50  ;;  %v653_v15 = vadd.f32 %v2952_v63, %v624_v9  ;;  %v4135_v50 = vld [vmem:[#allocation8_spill] sm:$0xff] }
 0x1d2   :  { %v1232_v53 = vpop.f32.mrf.mxu2 }
 0x1d3   :  { %v1233_v43 = vadd.f32 %v1232_v53, %v1204_v59  ;;  %v682_v7 = vadd.f32 %v4132_v21, %v653_v15 }
 0x1d4   :  { %v1261_v23 = vpop.f32.mrf.mxu3  ;;  %v1177_v22 = vpop.f32.mrf.mxu0 }
 0x1d5   :  { %v1178_v11 = vadd.f32 %v1177_v22, %v1149_v30  ;;  %v1262_v35 = vadd.f32 %v1261_v23, %v1233_v43  ;;  %v688_v30 = vadd.f32 %v3114_v45, %v659_v51 }
 0x1d6   :  { %v1206_v17 = vpop.f32.mrf.mxu1 }
 0x1d7   :  { %v1207_v4 = vadd.f32 %v1206_v17, %v1178_v11  ;;  %v1726_v36 = vmul.f32 -1.442695, %v1262_v35  ;;  %v717_v54 = vadd.f32 %v3362_v14, %v688_v30  ;;  %v714_v14 = vadd.f32 %v4130_v57, %v685_v42  ;;  %v4133_v35 = vld [vmem:[#allocation17_spill] sm:$0xff]  ;;  %v4144_v57 = vld [vmem:[#allocation6_spill] sm:$0xff] }
 0x1d9   :  { %1734 = vpow2.f32 %v1726_v36  ;;  %v746_v17 = vadd.f32 %v4131_v61, %v717_v54  ;;  %v711_v36 = vadd.f32 %v4135_v50, %v682_v7 }
 0x1da   :  { %v1235_v3 = vpop.f32.mrf.mxu2 }
 0x1db   :  { %v1236_v13 = vadd.f32 %v1235_v3, %v1207_v4  ;;  %v775_v4 = vadd.f32 %v4133_v35, %v746_v17  ;;  %v4134_v3 = vld [vmem:[#allocation2_spill] sm:$0xff]  ;;  %v4145_v17 = vld [vmem:[#allocation11_spill] sm:$0xff] }
 0x1dc   :  { %v1264_v29 = vpop.f32.mrf.mxu3  ;;  %v1180_v24 = vpop.f32.mrf.mxu0 }
 0x1dd   :  { %v1265_v10 = vadd.f32 %v1264_v29, %v1236_v13  ;;  %v1181_v52 = vadd.f32 %v1180_v24, %v1152_v26  ;;  %v679_v13 = vadd.f32 %v4134_v3, %v650_v41  ;;  %v4136_v29 = vld [vmem:[#allocation13_spill] sm:$0xff] }
 0x1de   :  { %v1209_v0 = vpop.f32.mrf.mxu1  ;;  %v743_v24 = vadd.f32 %v4136_v29, %v714_v14 }
 0x1df   :  { %v1728_v48 = vmul.f32 -1.442695, %v1265_v10  ;;  %v1210_v37 = vadd.f32 %v1209_v0, %v1181_v52  ;;  %v1735_v16 = vpop.eup %1734 }
 0x1e0   :  { %v3938_v38 = vadd.f32 1.0, %v1735_v16  ;;  %v4140_v16 = vld [vmem:[#allocation9_spill] sm:$0xff] }
 0x1e1   :  { %1736 = vpow2.f32 %v1728_v48  ;;  %v708_v48 = vadd.f32 %v4137_v8, %v679_v13 }
 0x1e2   :  { %v1238_v40 = vpop.f32.mrf.mxu2  ;;  %1738 = vpow2.f32 %v1724_v20  ;;  %v4138_v20 = vld [vmem:[#allocation14_spill] sm:$0xff]  ;;  %vm1577_vm9 = vweird.f32 %v3938_v38 }
 0x1e3   :  { %v1239_v58 = vadd.f32 %v1238_v40, %v1210_v37  ;;  %v772_v0 = vadd.f32 %v4138_v20, %v743_v24  ;;  %v804_v37 = vadd.f32 %v4139_v62, %v775_v4  ;;  %v737_v51 = vadd.f32 %v4141_v19, %v708_v48 }
 0x1e4   :  { %v1581_v20 = vand.u32 2147483647, %v3938_v38 }
 0x1e5   :  { %v801_v9 = vadd.f32 %v4143_v25, %v772_v0  ;;  %v766_v14 = vadd.f32 %v4144_v57, %v737_v51  ;;  %v4148_v0 = vld [vmem:[#allocation7_spill] sm:$0xff] }
 0x1e6   :  { %vm1582_vm12 = vcmp.eq.f32.partialorder %v1581_v20, 8.507059e+37 }
 0x1e7   :  { %v1737_v55 = vpop.eup %1736  ;;  %v795_v62 = vadd.f32 %v4148_v0, %v766_v14 }
 0x1e8   :  { %v3931_v18 = vpop.f32.mrf.mxu0  ;;  %v3934_v49 = vadd.f32 1.0, %v1737_v55  ;;  %v1739_v5 = vpop.eup %1738 }
 0x1e9   :  { %v3947_v33 = vadd.f32 1.0, %v1739_v5 }
 0x1ea   :  { %v1267_v47 = vpop.f32.mrf.mxu3  ;;  %1740 = vrcp.f32 %v3934_v49  ;;  %vm1607_vm2 = vweird.f32 %v3934_v49  ;;  %v1613_v61 = vand.u32 2147483648, %v3934_v49  ;;  %v1611_v4 = vand.u32 2147483647, %v3934_v49 }
 0x1eb   :  { %v1268_v28 = vadd.f32 %v1267_v47, %v1239_v58  ;;  %v3942_v32 = vpop.f32.mrf.mxu1  ;;  %v740_v47 = vadd.f32 %v4140_v16, %v711_v36  ;;  %vm1547_vm13 = vweird.f32 %v3947_v33 }
 0x1ec   :  { %vm1612_vm8 = vcmp.eq.f32.partialorder %v1611_v4, 8.507059e+37 }
 0x1ed   :  { %v1730_v53 = vmul.f32 -1.442695, %v1268_v28 }
 0x1ef   :  { %1742 = vpow2.f32 %v1730_v53  ;;  %v4142_v53 = vld [vmem:[#allocation10_spill] sm:$0xff] }
 0x1f0   :  { %1744 = vrcp.f32 %v3938_v38  ;;  %v3950_v46 = vpop.f32.mrf.mxu2  ;;  %v3954_v59 = vpop.eup %1740  ;;  %v769_v5 = vadd.f32 %v4142_v53, %v740_v47 }
 0x1f1   :  { %1746 = vrcp.f32 %v3947_v33  ;;  %v3961_v45 = vpop.f32.mrf.mxu0  ;;  %v1603_v1 = vmul.f32 %v3954_v59, %v3934_v49  ;;  %vm1608_vm0 = vweird.f32 %v3954_v59  ;;  %v1614_v49 = vor.u32 1.1754944e-38, %v1613_v61 }
 0x1f2   :  { %v3956_v23 = vpop.f32.mrf.mxu3  ;;  %vm4008_vm4 = vmor %vm1607_vm2, %vm1608_vm0 }
 0x1f3   :  { %v1604_v52 = vsub.f32 1.0, %v1603_v1  ;;  %v798_v1 = vadd.f32 %v4145_v17, %v769_v5 }
 0x1f4   :  { %v3970_v63 = vpop.f32.mrf.mxu1 }
 0x1f5   :  { %v1743_v22 = vpop.eup %1742  ;;  %v1605_v56 = vmul.f32 %v3954_v59, %v1604_v52  ;;  %v1583_v52 = vand.u32 2147483648, %v3938_v38 }
 0x1f6   :  { %v1540_v43 = vadd.f32 1.0, %v1743_v22  ;;  %v3964_v11 = vpop.eup %1744 }
 0x1f7   :  { %v1573_v6 = vmul.f32 %v3964_v11, %v3938_v38  ;;  %v3977_v26 = vpop.eup %1746  ;;  %v1606_v41 = vadd.f32 %v3954_v59, %v1605_v56  ;;  %vm1578_vm6 = vweird.f32 %v3964_v11  ;;  %v1553_v56 = vand.u32 2147483648, %v3947_v33 }
 0x1f8   :  { %1748 = vrcp.f32 %v1540_v43  ;;  %v3981_v10 = vpop.f32.mrf.mxu2  ;;  %v1543_v58 = vmul.f32 %v3977_v26, %v3947_v33  ;;  %v1643_v34 = vand.u32 2147483648, %v1540_v43  ;;  %v1641_v42 = vand.u32 2147483647, %v1540_v43  ;;  %vm4027_vm10 = vmor %vm1577_vm9, %vm1578_vm6 }
 0x1f9   :  { %v1574_v2 = vsub.f32 1.0, %v1573_v6  ;;  %v3991_v28 = vpop.f32.mrf.mxu0  ;;  %1750 = vtanh.f32 %v804_v37  ;;  %vm1637_vm3 = vweird.f32 %v1540_v43  ;;  %vm1548_vm11 = vweird.f32 %v3977_v26 }
 0x1fa   :  { %v1544_v22 = vsub.f32 1.0, %v1543_v58  ;;  %1752 = vtanh.f32 %v801_v9  ;;  %v1644_v3 = vor.u32 1.1754944e-38, %v1643_v34  ;;  %vm1642_vm7 = vcmp.eq.f32.partialorder %v1641_v42, 8.507059e+37  ;;  %vm1549_vm14 = vmor %vm1547_vm13, %vm1548_vm11 }
 0x1fb   :  { %v1575_v54 = vmul.f32 %v3964_v11, %v1574_v2  ;;  %1754 = vtanh.f32 %v798_v1  ;;  %v1814_v2 = vld [vmem:[%s4109_s2] sm:$0xf] }
 0x1fc   :  { %v3988_v31 = vpop.f32.mrf.mxu3  ;;  %v3997_v30 = vpop.f32.mrf.mxu1  ;;  %v1545_v13 = vmul.f32 %v3977_v26, %v1544_v22  ;;  %v569_v16 = vperm.slane %v1814_v2, 3  ;;  %1756 = vtanh.f32 %v795_v62 }
 0x1fd   :  { %v1576_v36 = vadd.f32 %v3964_v11, %v1575_v54 }
 0x1fe   :  { %v1749_v40 = vpop.eup %1748  ;;  %v1546_v58 = vadd.f32 %v3977_v26, %v1545_v13  ;;  %v1291_v51 = vadd.f32 %v3961_v45, %v569_v16  ;;  %v1288_v34 = vadd.f32 %v3931_v18, %v569_v16 }
 0x1ff   :  { %v1633_v55 = vmul.f32 %v1749_v40, %v1540_v43  ;;  %vm1638_vm1 = vweird.f32 %v1749_v40  ;;  %v1751_v6 = vpop.eup %1750  ;;  %v1610_v43 = vsel %vm4008_vm4, %v3954_v59, %v1606_v41 }
 0x200   :  { %v4006_v21 = vpop.f32.mrf.mxu2  ;;  %vm1639_vm5 = vmor %vm1637_vm3, %vm1638_vm1  ;;  %v1615_v37 = vsel %vm1612_vm8, %v1614_v49, %v1610_v43  ;;  %v1753_v38 = vpop.eup %1752  ;;  %v1550_v25 = vsel %vm1549_vm14, %v3977_v26, %v1546_v58  ;;  %v1320_v22 = vadd.f32 %v3970_v63, %v1291_v51  ;;  %v1317_v45 = vadd.f32 %v3942_v32, %v1288_v34 }
 0x201   :  { %v1634_v12 = vsub.f32 1.0, %v1633_v55  ;;  %v1296_v8 = vpop.f32.mrf.mxu0  ;;  %v1584_v55 = vor.u32 1.1754944e-38, %v1583_v52  ;;  %v1666_v19 = vmul.f32 %v1753_v38, %v1615_v37  ;;  %v1755_v9 = vpop.eup %1754  ;;  %v1294_v26 = vadd.f32 %v3991_v28, %v569_v16 }
 0x202   :  { %v1757_v41 = vpop.eup %1756  ;;  %v1349_v61 = vadd.f32 %v3981_v10, %v1320_v22  ;;  %v1346_v18 = vadd.f32 %v3950_v46, %v1317_v45  ;;  %v1670_v45 = vld [vmem:[%s4110_s3] sm:$0xff] }
 0x203   :  { %v1635_v15 = vmul.f32 %v1749_v40, %v1634_v12  ;;  %v1554_v12 = vor.u32 1.1754944e-38, %v1553_v56  ;;  %v1323_v63 = vadd.f32 %v3997_v30, %v1294_v26 }
 0x204   :  { %v4019_v29 = vpop.f32.mrf.mxu3  ;;  %v1325_v47 = vpop.f32.mrf.mxu1  ;;  %v1378_v1 = vadd.f32 %v3988_v31, %v1349_v61 }
 0x205   :  { %v1636_v7 = vadd.f32 %v1749_v40, %v1635_v15  ;;  %v1352_v13 = vadd.f32 %v4006_v21, %v1323_v63 }
 0x207   :  { %v1640_v50 = vsel %vm1639_vm5, %v1749_v40, %v1636_v7  ;;  %v1580_v40 = vsel %vm4027_vm10, %v3964_v11, %v1576_v36  ;;  %v1551_v11 = vand.u32 2147483647, %v3947_v33  ;;  %v1381_v43 = vadd.f32 %v4019_v29, %v1352_v13 }
 0x208   :  { %v1645_v24 = vsel %vm1642_vm7, %v1644_v3, %v1640_v50  ;;  %v1585_v53 = vsel %vm1582_vm12, %v1584_v55, %v1580_v40  ;;  %v1354_v5 = vpop.f32.mrf.mxu2  ;;  %v1375_v3 = vadd.f32 %v3956_v23, %v1346_v18  ;;  %v1815_v18 = vmov 0  }
 0x209   :  { %v1668_v48 = vmul.f32 %v1751_v6, %v1645_v24  ;;  %v1664_v54 = vmul.f32 %v1755_v9, %v1585_v53  ;;  %vm1552_vm15 = vcmp.eq.f32.partialorder %v1551_v11, 8.507059e+37  ;;  %v1297_v6 = vadd.f32 %v1296_v8, %v569_v16  ;;  %1733 = vset.pattern.permute.xlu0 %v1815_v18 }
 0x20a   :  { %v1555_v42 = vsel %vm1552_vm15, %v1554_v12, %v1550_v25 }
 0x20b   :  { %1690 = vmatpush.xpose.msra.mxu0 %v1668_v48  ;;  %v1662_v14 = vmul.f32 %v1757_v41, %v1555_v42  ;;  %v1326_v46 = vadd.f32 %v1325_v47, %v1297_v6 }
 0x20c   :  { %v1383_v15 = vpop.f32.mrf.mxu3 }
 0x20d   :  { %v1355_v0 = vadd.f32 %v1354_v5, %v1326_v46 }
 0x20f   :  { %1691 = vmatpush.xpose.msra.mxu0 %v1666_v19  ;;  %v1384_v8 = vadd.f32 %v1383_v15, %v1355_v0 }
 0x213   :  { %1692 = vmatpush.xpose.msra.mxu0 %v1664_v54 }
 0x217   :  { %1693 = vmatpush.xpose.msra.mxu0 %v1662_v14  ;;  %v1672_v14 = vld [vmem:[%s4111_s4] sm:$0xff] }
 0x218   :  { %1675 = vperm.xlu0 %1733, %v1672_v14  }
 0x21a   :  { %1694 = vmatmul.f32.vlgmr.msra.gmra.mxu0 %v1670_v45 }
 0x227   :  { %v1403_v33 = vpop.f32.mrf.mxu0 }
 0x228   :  { %v1404_v10 = vadd.f32 %v1403_v33, %v1375_v3 }
 0x22b   :  { %v1432_v57 = vpop.f32.mrf.mxu1 }
 0x22c   :  { %v1433_v24 = vadd.f32 %v1432_v57, %v1404_v10 }
 0x22f   :  { %v1461_v17 = vpop.f32.mrf.mxu2  ;;  %v1406_v7 = vpop.f32.mrf.mxu0 }
 0x230   :  { %v1407_v4 = vadd.f32 %v1406_v7, %v1378_v1  ;;  %v1462_v52 = vadd.f32 %v1461_v17, %v1433_v24 }
 0x232   :  { %v1490_v35 = vpop.f32.mrf.mxu3 }
 0x233   :  { %v1435_v32 = vpop.f32.mrf.mxu1  ;;  %v1491_v62 = vadd.f32 %v1490_v35, %v1462_v52 }
 0x234   :  { %v1436_v50 = vadd.f32 %v1435_v32, %v1407_v4 }
 0x235   :  { %v1725_v2 = vmul.f32 -1.442695, %v1491_v62 }
 0x237   :  { %v1464_v28 = vpop.f32.mrf.mxu2  ;;  %v1409_v31 = vpop.f32.mrf.mxu0 }
 0x238   :  { %v1465_v36 = vadd.f32 %v1464_v28, %v1436_v50  ;;  %v1410_v30 = vadd.f32 %v1409_v31, %v1381_v43 }
 0x23a   :  { %v1493_v49 = vpop.f32.mrf.mxu3 }
 0x23b   :  { %v1494_v48 = vadd.f32 %v1493_v49, %v1465_v36  ;;  %v1438_v20 = vpop.f32.mrf.mxu1 }
 0x23c   :  { %v1439_v23 = vadd.f32 %v1438_v20, %v1410_v30 }
 0x23d   :  { %v1727_v37 = vmul.f32 -1.442695, %v1494_v48 }
 0x23f   :  { %v1467_v21 = vpop.f32.mrf.mxu2  ;;  %v1412_v40 = vpop.f32.mrf.mxu0  ;;  %1758 = vpow2.f32 %v1727_v37 }
 0x240   :  { %v1468_v59 = vadd.f32 %v1467_v21, %v1439_v23  ;;  %v1413_v38 = vadd.f32 %v1412_v40, %v1384_v8 }
 0x242   :  { %v1496_v58 = vpop.f32.mrf.mxu3 }
 0x243   :  { %v1497_v29 = vadd.f32 %v1496_v58, %v1468_v59  ;;  %v1441_v16 = vpop.f32.mrf.mxu1 }
 0x244   :  { %v1442_v55 = vadd.f32 %v1441_v16, %v1413_v38 }
 0x245   :  { %v1729_v47 = vmul.f32 -1.442695, %v1497_v29  ;;  %v1759_v11 = vpop.eup %1758 }
 0x246   :  { %v4055_v25 = vadd.f32 1.0, %v1759_v11  ;;  %v1671_v11 = vld [vmem:[%s4110_s3 + $0x8] sm:$0xff] }
 0x247   :  { %1760 = vpow2.f32 %v1729_v47  ;;  %v1470_v56 = vpop.f32.mrf.mxu2 }
 0x248   :  { %1762 = vpow2.f32 %v1725_v2  ;;  %v1471_v19 = vadd.f32 %v1470_v56, %v1442_v55  ;;  %v1598_v0 = vand.u32 2147483648, %v4055_v25  ;;  %vm1592_vm9 = vweird.f32 %v4055_v25 }
 0x24a   :  { %v1499_v51 = vpop.f32.mrf.mxu3  ;;  %v1599_v59 = vor.u32 1.1754944e-38, %v1598_v0 }
 0x24b   :  { %v1500_v53 = vadd.f32 %v1499_v51, %v1471_v19 }
 0x24d   :  { %v1761_v5 = vpop.eup %1760  ;;  %v1731_v9 = vmul.f32 -1.442695, %v1500_v53 }
 0x24e   :  { %v1763_v12 = vpop.eup %1762  ;;  %v1539_v34 = vadd.f32 1.0, %v1761_v5 }
 0x24f   :  { %1764 = vpow2.f32 %v1731_v9  ;;  %v4057_v54 = vadd.f32 1.0, %v1763_v12 }
 0x250   :  { %1766 = vrcp.f32 %v1539_v34  ;;  %vm1622_vm2 = vweird.f32 %v1539_v34  ;;  %v1628_v28 = vand.u32 2147483648, %v1539_v34  ;;  %v1626_v36 = vand.u32 2147483647, %v1539_v34 }
 0x251   :  { %1768 = vrcp.f32 %v4055_v25  ;;  %v1568_v40 = vand.u32 2147483648, %v4057_v54  ;;  %vm1562_vm13 = vweird.f32 %v4057_v54 }
 0x252   :  { %1770 = vrcp.f32 %v4057_v54  ;;  %v1629_v20 = vor.u32 1.1754944e-38, %v1628_v28  ;;  %vm1627_vm8 = vcmp.eq.f32.partialorder %v1626_v36, 8.507059e+37 }
 0x253   :  { %v1569_v16 = vor.u32 1.1754944e-38, %v1568_v40 }
 0x255   :  { %v1765_v22 = vpop.eup %1764 }
 0x256   :  { %v1767_v15 = vpop.eup %1766  ;;  %v1541_v42 = vadd.f32 1.0, %v1765_v22 }
 0x257   :  { %v4061_v33 = vpop.eup %1768  ;;  %v1618_v41 = vmul.f32 %v1767_v15, %v1539_v34  ;;  %vm1623_vm0 = vweird.f32 %v1767_v15 }
 0x258   :  { %1772 = vrcp.f32 %v1541_v42  ;;  %v1588_v57 = vmul.f32 %v4061_v33, %v4055_v25  ;;  %v4071_v61 = vpop.eup %1770  ;;  %v1658_v3 = vand.u32 2147483648, %v1541_v42  ;;  %v1656_v10 = vand.u32 2147483647, %v1541_v42  ;;  %vm4077_vm4 = vmor %vm1622_vm2, %vm1623_vm0 }
 0x259   :  { %v1619_v26 = vsub.f32 1.0, %v1618_v41  ;;  %v1558_v1 = vmul.f32 %v4071_v61, %v4057_v54  ;;  %1774 = vtanh.f32 %v3912_v60  ;;  %vm1652_vm3 = vweird.f32 %v1541_v42 }
 0x25a   :  { %v1589_v63 = vsub.f32 1.0, %v1588_v57  ;;  %1776 = vtanh.f32 %v3893_v44  ;;  %v1659_v60 = vor.u32 1.1754944e-38, %v1658_v3  ;;  %vm1593_vm6 = vweird.f32 %v4061_v33 }
 0x25b   :  { %v1620_v35 = vmul.f32 %v1767_v15, %v1619_v26  ;;  %v1559_v13 = vsub.f32 1.0, %v1558_v1  ;;  %vm1657_vm7 = vcmp.eq.f32.partialorder %v1656_v10, 8.507059e+37  ;;  %v1596_v44 = vand.u32 2147483647, %v4055_v25  ;;  %vm1594_vm10 = vmor %vm1592_vm9, %vm1593_vm6 }
 0x25c   :  { %v1590_v32 = vmul.f32 %v4061_v33, %v1589_v63  ;;  %1778 = vtanh.f32 %v3838_v39  ;;  %vm1563_vm11 = vweird.f32 %v4071_v61  ;;  %v1566_v39 = vand.u32 2147483647, %v4057_v54 }
 0x25d   :  { %v1621_v50 = vadd.f32 %v1767_v15, %v1620_v35  ;;  %v1560_v24 = vmul.f32 %v4071_v61, %v1559_v13  ;;  %vm1597_vm12 = vcmp.eq.f32.partialorder %v1596_v44, 8.507059e+37  ;;  %1780 = vtanh.f32 %v3783_v27  ;;  %vm1564_vm14 = vmor %vm1562_vm13, %vm1563_vm11 }
 0x25e   :  { %v1773_v17 = vpop.eup %1772  ;;  %v1591_v52 = vadd.f32 %v4061_v33, %v1590_v32  ;;  %vm1567_vm15 = vcmp.eq.f32.partialorder %v1566_v39, 8.507059e+37  ;;  %vm1718_vm0 = vcmask 261120  }
 0x25f   :  { %v1648_v7 = vmul.f32 %v1773_v17, %v1541_v42  ;;  %vm1653_vm1 = vweird.f32 %v1773_v17  ;;  %v1775_v31 = vpop.eup %1774  ;;  %v1625_v30 = vsel %vm4077_vm4, %v1767_v15, %v1621_v50  ;;  %v1561_v21 = vadd.f32 %v4071_v61, %v1560_v24 }
 0x260   :  { %vm1654_vm5 = vmor %vm1652_vm3, %vm1653_vm1  ;;  %v1630_v62 = vsel %vm1627_vm8, %v1629_v20, %v1625_v30  ;;  %v1595_v37 = vsel %vm1594_vm10, %v4061_v33, %v1591_v52  ;;  %v1777_v8 = vpop.eup %1776 }
 0x261   :  { %v1649_v4 = vsub.f32 1.0, %v1648_v7  ;;  %v1667_v58 = vmul.f32 %v1777_v8, %v1630_v62  ;;  %v1600_v38 = vsel %vm1597_vm12, %v1599_v59, %v1595_v37  ;;  %v1565_v29 = vsel %vm1564_vm14, %v4071_v61, %v1561_v21 }
 0x262   :  { %v1779_v2 = vpop.eup %1778  ;;  %v1570_v55 = vsel %vm1567_vm15, %v1569_v16, %v1565_v29 }
 0x263   :  { %v1650_v6 = vmul.f32 %v1773_v17, %v1649_v4  ;;  %v1665_v47 = vmul.f32 %v1779_v2, %v1600_v38  ;;  %v1781_v56 = vpop.eup %1780 }
 0x264   :  { %v1663_v19 = vmul.f32 %v1781_v56, %v1570_v55 }
 0x265   :  { %v1651_v43 = vadd.f32 %v1773_v17, %v1650_v6 }
 0x267   :  { %v1655_v49 = vsel %vm1654_vm5, %v1773_v17, %v1651_v43 }
 0x268   :  { %v1660_v48 = vsel %vm1657_vm7, %v1659_v60, %v1655_v49 }
 0x269   :  { %v1669_v23 = vmul.f32 %v1775_v31, %v1660_v48 }
 0x26b   :  { %1710 = vmatpush.xpose.msra.mxu1 %v1669_v23 }
 0x26f   :  { %1711 = vmatpush.xpose.msra.mxu1 %v1667_v58 }
 0x273   :  { %1712 = vmatpush.xpose.msra.mxu1 %v1665_v47 }
 0x277   :  { %1713 = vmatpush.xpose.msra.mxu1 %v1663_v19 }
 0x27a   :  { %1714 = vmatmul.f32.vlgmr.msra.gmra.mxu1 %v1671_v11 }
 0x28a   :  { %v1676_v27 = vpop.permute.xlu0 %1675 }
 0x297   :  { %v1695_v51 = vpop.f32.mrf.mxu0 }
 0x298   :  { %v1696_v53 = vadd.f32 %v1695_v51, %v1676_v27 }
 0x2f7   :  { %v1715_v5 = vpop.f32.mrf.mxu1 }
 0x2f8   :  { %v1716_v25 = vadd.f32 %v1715_v5, %v1696_v53 }
 0x2fa   :  { %1719 = vst.msk [vmem:[%s4112_s5] sm:$0xff] %vm1718_vm0, %v1716_v25 }

</bundles_post_ra>
